<compile_context>
chip_gen: v6e
topology: v6e:2x2x1
jax: 0.10.0
libtpu: 0.0.40
codegen_flags: <defaults>
</compile_context>

<pallas_src>
import jax
import jax.numpy as jnp
from jax import lax
from jax.experimental import pallas as pl
from jax.experimental.pallas import tpu as pltpu

HI = jax.lax.Precision.HIGHEST   # only used by the f32 validation reference
_PAD = 8                         # data rows live at [_PAD, _PAD+T); the zero rows at
                                 # _PAD-1 and _PAD+T give the conv its zero padding.
                                 # Offset 8 keeps every scratch *write* sublane-aligned.


# ----------------------------------------------------------------------------------
# Fused CRNN kernel
# ----------------------------------------------------------------------------------
def _crnn_kernel(x_ref,
                 w0_ref, sc0_ref, sh0_ref,
                 w1_ref, sc1_ref, sh1_ref,
                 w2_ref, sc2_ref, sh2_ref,
                 w3_ref, sc3_ref, sh3_ref,
                 wih_ref, whh_ref, bih_ref, bhh_ref, we_ref, be_ref,
                 o_ref,
                 buf0_ref, buf1_ref, hall_ref):
    B, T, C0 = x_ref.shape         # recurrence length B, GRU "batch" T
    H = whh_ref.shape[0]           # hidden size (natural width, no lane padding)
    CMAX = buf0_ref.shape[-1]      # 64 = widest conv channel count

    # ---- zero ONLY the halo rows (aligned 8-row blocks); interiors get overwritten --
    halo = jnp.zeros((B, _PAD, CMAX), jnp.float32)
    buf0_ref[:, :_PAD, :] = halo
    buf0_ref[:, _PAD + T:, :] = halo
    buf1_ref[:, :_PAD, :] = halo
    buf1_ref[:, _PAD + T:, :] = halo

    # stage the channels-last input (interior rows only)
    buf0_ref[:, _PAD:_PAD + T, :C0] = x_ref[...]

    # ---- conv stack: 4 x (Conv1d k=3 s=1 p=1 + affine(bias/folded BN) + LeakyReLU) --
    # Each layer = ONE im2col matmul: LHS (B*T, 3*cin) bf16 x RHS (3*cin, cout) bf16,
    # f32 accumulation.  Intermediates never leave VMEM (ping-pong scratches).
    def conv_layer(src_ref, w_ref, sc_ref, sh_ref):
        cin = w_ref.shape[0] // 3
        taps = [src_ref[:, _PAD - 1 + k:_PAD - 1 + k + T, :cin] for k in range(3)]
        lhs = jnp.concatenate(taps, axis=-1).reshape(B * T, 3 * cin)
        acc = jnp.dot(lhs.astype(jnp.bfloat16), w_ref[...],
                      preferred_element_type=jnp.float32)
        acc = acc * sc_ref[...] + sh_ref[...]        # conv bias (+ eval-mode BN fold)
        return jnp.where(acc > 0, acc, 0.2 * acc)    # LeakyReLU(0.2), f32

    convs = [(w0_ref, sc0_ref, sh0_ref), (w1_ref, sc1_ref, sh1_ref),
             (w2_ref, sc2_ref, sh2_ref), (w3_ref, sc3_ref, sh3_ref)]
    bufs = [buf0_ref, buf1_ref]
    y = None
    for i, (w_ref, sc_ref, sh_ref) in enumerate(convs):
        y = conv_layer(bufs[i % 2], w_ref, sc_ref, sh_ref)       # (B*T, cout) f32
        if i < 3:                                                # last layer feeds GRU
            bufs[(i + 1) % 2][:, _PAD:_PAD + T, :y.shape[-1]] = y.reshape(B, T, -1)

    # ---- GRU (single layer, h0 = 0) + Linear -----------------------------------
    # Input-to-hidden projection for ALL recurrence steps at once (off the serial
    # path); gates packed [r | z | n] at natural width 3*H (no padded lanes).
    gx = jnp.dot(y.astype(jnp.bfloat16), wih_ref[...],
                 preferred_element_type=jnp.float32) + bih_ref[...]   # (B*T, 3H) f32

    whh = whh_ref[...]          # (H, 3H) bf16
    bhh = bhh_ref[...]          # (1, 3H) f32
    h = jnp.zeros((T, H), jnp.float32)
    # Serial recurrence over dim 0 (= PyTorch batch b).  B is tiny here, so a static
    # unroll with a per-step scratch store is fine; for large B switch to lax.fori_loop.
    for b in range(B):
        gxb = gx[b * T:(b + 1) * T, :]
        gh = jnp.dot(h.astype(jnp.bfloat16), whh,
                     preferred_element_type=jnp.float32) + bhh         # (T, 3H) f32
        r = jax.nn.sigmoid(gxb[:, :H] + gh[:, :H])
        z = jax.nn.sigmoid(gxb[:, H:2 * H] + gh[:, H:2 * H])
        n = jnp.tanh(gxb[:, 2 * H:] + r * gh[:, 2 * H:])
        h = (1.0 - z) * n + z * h
        hall_ref[b] = h                      # bound live ranges; feeds batched Linear

    # Final Linear over every recurrence step in ONE matmul; natural n_class width.
    hcat = hall_ref[...].reshape(B * T, H)
    out = jnp.dot(hcat.astype(jnp.bfloat16), we_ref[...],
                  preferred_element_type=jnp.float32) + be_ref[...]    # (B*T, n_class)
    o_ref[...] = out.reshape(B, T, -1)


def _whole_spec(arr):
    nd = arr.ndim
    return pl.BlockSpec(arr.shape, lambda i, _nd=nd: (0,) * _nd)


def crnn_forward(x_nct, packed):
    # x_nct: (b, input_dim, t) -- PyTorch Conv1d NCW layout.
    convs = packed["convs"]
    wih, whh, bih, bhh, we, be = packed["gru"]
    B, C0, T = x_nct.shape
    n_class = we.shape[1]
    CMAX = convs[-1][0].shape[-1]            # 64
    TP = T + 2 * _PAD

    x_btc = jnp.transpose(x_nct, (0, 2, 1))  # NCW -> channels-last, once in glue

    args = [x_btc]
    for (w, s, b) in convs:
        args += [w, s, b]
    args += [wih, whh, bih, bhh, we, be]

    out = pl.pallas_call(
        _crnn_kernel,
        out_shape=jax.ShapeDtypeStruct((B, T, n_class), jnp.float32),
        grid=(1,),
        in_specs=[_whole_spec(a) for a in args],
        out_specs=pl.BlockSpec((B, T, n_class), lambda i: (0, 0, 0)),
        scratch_shapes=[
            pltpu.VMEM((B, TP, CMAX), jnp.float32),   # ping
            pltpu.VMEM((B, TP, CMAX), jnp.float32),   # pong
            pltpu.VMEM((B, T, whh.shape[0]), jnp.float32),   # per-step hidden states
        ],
        # grid=(1,) at these toy sizes (everything fits one VMEM-resident step); see
        # the TODO at the top for the production-shape tiling across T / TensorCores.
        compiler_params=pltpu.CompilerParams(
            dimension_semantics=("arbitrary",),
            vmem_limit_bytes=64 * 1024 * 1024),
    )(*args)
    return out


# ----------------------------------------------------------------------------------
# Pure-JAX reference (for correctness check) -- uses the natural (per-gate) params.
#   mxu_bf16=True  : rounds matmul inputs to bf16 (f32 accumulation), matching the
#                    kernel's MXU precision -> tight structural/indexing check.
#   mxu_bf16=False : full-f32 HIGHEST precision -> loose numerical sanity check.
# ----------------------------------------------------------------------------------
def reference_forward(x_nct, params, mxu_bf16=False):
    def mm(a, b):
        if mxu_bf16:
            return jnp.dot(a.astype(jnp.bfloat16), b.astype(jnp.bfloat16),
                           preferred_element_type=jnp.float32)
        return jnp.dot(a, b, precision=HI, preferred_element_type=jnp.float32)

    h = jnp.transpose(x_nct, (0, 2, 1)).astype(jnp.float32)
    for (w, scale, shift) in params["convs"]:
        T = h.shape[1]
        hp = jnp.pad(h, ((0, 0), (1, 1), (0, 0)))
        acc = sum(mm(hp[:, k:k + T, :], w[k]) for k in range(3))
        acc = acc * scale[None] + shift[None]
        h = jnp.where(acc > 0, acc, 0.2 * acc)

    wih, whh, bih, bhh, we, be = params["gru"]
    H = whh.shape[-1]

    def step(hs, xt):
        gi = [mm(xt, wih[k]) + bih[k] for k in range(3)]
        gh = [mm(hs, whh[k]) + bhh[k] for k in range(3)]
        r = jax.nn.sigmoid(gi[0] + gh[0])
        z = jax.nn.sigmoid(gi[1] + gh[1])
        n = jnp.tanh(gi[2] + r * gh[2])
        hn = (1.0 - z) * n + z * hs
        return hn, mm(hn, we) + be

    hs0 = jnp.zeros((h.shape[1], H), jnp.float32)
    _, outs = lax.scan(step, hs0, h)              # scan over dim 0 (= batch b)
    return outs


# ----------------------------------------------------------------------------------
# Deterministic parameter init (synthetic, not a checkpoint load) + kernel repacking
# ----------------------------------------------------------------------------------
def init_params(key, input_dim, lstm_hidden, n_class):
    chans = [input_dim, 16, 32, 32, 64]           # convRelu(0..3)
    bn_layer = 3                                  # convRelu(3, True) has BatchNorm1d
    eps = 1e-5
    convs = []
    for i in range(4):
        cin, cout = chans[i], chans[i + 1]
        key, kw, kb, kg, kbt, km, kv = jax.random.split(key, 7)
        w = jax.random.normal(kw, (3, cin, cout), jnp.float32) / jnp.sqrt(3.0 * cin)
        bias = 0.1 * jax.random.normal(kb, (cout,), jnp.float32)
        if i == bn_layer:
            gamma = 1.0 + 0.1 * jax.random.normal(kg, (cout,), jnp.float32)
            beta = 0.1 * jax.random.normal(kbt, (cout,), jnp.float32)
            mean = 0.1 * jax.random.normal(km, (cout,), jnp.float32)
            var = 0.5 + jax.random.uniform(kv, (cout,), jnp.float32)
            scale = gamma / jnp.sqrt(var + eps)
            shift = (bias - mean) * scale + beta
        else:
            scale = jnp.ones((cout,), jnp.float32)
            shift = bias
        convs.append((w, scale.reshape(1, cout), shift.reshape(1, cout)))

    H, nIn = lstm_hidden, 64
    key, k1, k2, k3, k4, k5, k6 = jax.random.split(key, 7)
    s = 1.0 / jnp.sqrt(jnp.float32(H))
    wih = jax.random.uniform(k1, (3, nIn, H), jnp.float32, -s, s)   # gates [r, z, n]
    whh = jax.random.uniform(k2, (3, H, H), jnp.float32, -s, s)
    bih = jax.random.uniform(k3, (3, 1, H), jnp.float32, -s, s)
    bhh = jax.random.uniform(k4, (3, 1, H), jnp.float32, -s, s)
    we = jax.random.uniform(k5, (H, n_class), jnp.float32, -s, s)
    be = jax.random.uniform(k6, (1, n_class), jnp.float32, -s, s)
    return {"convs": convs, "gru": (wih, whh, bih, bhh, we, be)}


def pack_params(params):
    """One-time repack into the kernel layout:
       * conv weights flattened to (3*cin, cout) im2col form, cast to bf16,
       * GRU gate weights/biases concatenated [r|z|n] at natural width 3*H,
       * MXU-side weights (wih, whh, we) cast to bf16; scales/biases stay f32."""
    convs = []
    for (w, scale, shift) in params["convs"]:
        k, cin, cout = w.shape
        convs.append((w.reshape(k * cin, cout).astype(jnp.bfloat16), scale, shift))

    wih, whh, bih, bhh, we, be = params["gru"]
    wih_c = jnp.concatenate([wih[g] for g in range(3)], axis=1).astype(jnp.bfloat16)
    whh_c = jnp.concatenate([whh[g] for g in range(3)], axis=1).astype(jnp.bfloat16)
    bih_c = jnp.concatenate([bih[g] for g in range(3)], axis=1)
    bhh_c = jnp.concatenate([bhh[g] for g in range(3)], axis=1)
    return {"convs": convs,
            "gru": (wih_c, whh_c, bih_c, bhh_c, we.astype(jnp.bfloat16), be)}


if __name__ == "__main__":
    B, INPUT_DIM, T = 2, 4, 16
    LSTM_HIDDEN, N_CLASS = 32, 8

    key = jax.random.PRNGKey(0)
    key, kx = jax.random.split(key)
    x = jax.random.normal(kx, (B, INPUT_DIM, T), jnp.float32)   # NCW, like PyTorch

    params = init_params(key, INPUT_DIM, LSTM_HIDDEN, N_CLASS)
    packed = pack_params(params)

    fwd = jax.jit(crnn_forward)
    out = jax.block_until_ready(fwd(x, packed))
    assert out.shape == (B, T, N_CLASS), out.shape

    # Tight check vs an MXU-precision-matched reference (same bf16-in / f32-acc
    # convention): validates the kernel structure, indexing and GRU semantics.
    ref_bf16 = jax.block_until_ready(reference_forward(x, params, mxu_bf16=True))
    err_bf16 = float(jnp.max(jnp.abs(out - ref_bf16)))
    assert err_bf16 < 1e-2, f"mismatch vs bf16-matched reference: max abs {err_bf16}"

    # Loose sanity check vs a full-f32 HIGHEST reference: the gap is purely the
    # expected bf16 MXU rounding through 4 conv layers + GRU + Linear.
    ref_f32 = jax.block_until_ready(reference_forward(x, params, mxu_bf16=False))
    err_f32 = float(jnp.max(jnp.abs(out - ref_f32)))
    assert err_f32 < 1e-1, f"mismatch vs f32 reference: max abs {err_f32}"

    print("KERNEL_OK")
</pallas_src>

<mosaic_0001>
module attributes {stable_mosaic.version = 11 : i64} {
  func.func @_crnn_kernel(%arg0: i32, %arg1: memref<2x16x4xf32, #tpu.memory_space<vmem>>, %arg2: memref<12x16xbf16, #tpu.memory_space<vmem>>, %arg3: memref<1x16xf32, #tpu.memory_space<vmem>>, %arg4: memref<1x16xf32, #tpu.memory_space<vmem>>, %arg5: memref<48x32xbf16, #tpu.memory_space<vmem>>, %arg6: memref<1x32xf32, #tpu.memory_space<vmem>>, %arg7: memref<1x32xf32, #tpu.memory_space<vmem>>, %arg8: memref<96x32xbf16, #tpu.memory_space<vmem>>, %arg9: memref<1x32xf32, #tpu.memory_space<vmem>>, %arg10: memref<1x32xf32, #tpu.memory_space<vmem>>, %arg11: memref<96x64xbf16, #tpu.memory_space<vmem>>, %arg12: memref<1x64xf32, #tpu.memory_space<vmem>>, %arg13: memref<1x64xf32, #tpu.memory_space<vmem>>, %arg14: memref<64x96xbf16, #tpu.memory_space<vmem>>, %arg15: memref<32x96xbf16, #tpu.memory_space<vmem>>, %arg16: memref<1x96xf32, #tpu.memory_space<vmem>>, %arg17: memref<1x96xf32, #tpu.memory_space<vmem>>, %arg18: memref<32x8xbf16, #tpu.memory_space<vmem>>, %arg19: memref<1x8xf32, #tpu.memory_space<vmem>>, %arg20: memref<2x16x8xf32, #tpu.memory_space<vmem>>, %arg21: memref<2x32x64xf32, #tpu.memory_space<vmem>>, %arg22: memref<2x32x64xf32, #tpu.memory_space<vmem>>, %arg23: memref<2x16x32xf32, #tpu.memory_space<vmem>>) attributes {dimension_semantics = [#tpu.dimension_semantics<arbitrary>], iteration_bounds = array<i64: 1>, scalar_prefetch = 0 : i64, scratch_operands = 3 : i64, tpu.core_type = #tpu.core_type<tc>, window_params = [{pipeline_mode = #tpu.pipeline_mode<synchronous>, transform_indices = @transform_0, window_bounds = array<i64: 2, 16, 4>}, {pipeline_mode = #tpu.pipeline_mode<synchronous>, transform_indices = @transform_1, window_bounds = array<i64: 12, 16>}, {pipeline_mode = #tpu.pipeline_mode<synchronous>, transform_indices = @transform_2, window_bounds = array<i64: 1, 16>}, {pipeline_mode = #tpu.pipeline_mode<synchronous>, transform_indices = @transform_3, window_bounds = array<i64: 1, 16>}, {pipeline_mode = #tpu.pipeline_mode<synchronous>, transform_indices = @transform_4, window_bounds = array<i64: 48, 32>}, {pipeline_mode = #tpu.pipeline_mode<synchronous>, transform_indices = @transform_5, window_bounds = array<i64: 1, 32>}, {pipeline_mode = #tpu.pipeline_mode<synchronous>, transform_indices = @transform_6, window_bounds = array<i64: 1, 32>}, {pipeline_mode = #tpu.pipeline_mode<synchronous>, transform_indices = @transform_7, window_bounds = array<i64: 96, 32>}, {pipeline_mode = #tpu.pipeline_mode<synchronous>, transform_indices = @transform_8, window_bounds = array<i64: 1, 32>}, {pipeline_mode = #tpu.pipeline_mode<synchronous>, transform_indices = @transform_9, window_bounds = array<i64: 1, 32>}, {pipeline_mode = #tpu.pipeline_mode<synchronous>, transform_indices = @transform_10, window_bounds = array<i64: 96, 64>}, {pipeline_mode = #tpu.pipeline_mode<synchronous>, transform_indices = @transform_11, window_bounds = array<i64: 1, 64>}, {pipeline_mode = #tpu.pipeline_mode<synchronous>, transform_indices = @transform_12, window_bounds = array<i64: 1, 64>}, {pipeline_mode = #tpu.pipeline_mode<synchronous>, transform_indices = @transform_13, window_bounds = array<i64: 64, 96>}, {pipeline_mode = #tpu.pipeline_mode<synchronous>, transform_indices = @transform_14, window_bounds = array<i64: 32, 96>}, {pipeline_mode = #tpu.pipeline_mode<synchronous>, transform_indices = @transform_15, window_bounds = array<i64: 1, 96>}, {pipeline_mode = #tpu.pipeline_mode<synchronous>, transform_indices = @transform_16, window_bounds = array<i64: 1, 96>}, {pipeline_mode = #tpu.pipeline_mode<synchronous>, transform_indices = @transform_17, window_bounds = array<i64: 32, 8>}, {pipeline_mode = #tpu.pipeline_mode<synchronous>, transform_indices = @transform_18, window_bounds = array<i64: 1, 8>}, {pipeline_mode = #tpu.pipeline_mode<synchronous>, transform_indices = @transform_19, window_bounds = array<i64: 2, 16, 8>}]} {
    %cst = arith.constant 0.000000e+00 : f32
    %0 = vector.broadcast %cst : f32 to vector<2x8x64xf32>
    %c0 = arith.constant 0 : index
    %c0_0 = arith.constant 0 : index
    %c0_1 = arith.constant 0 : index
    %1 = vector.load %arg21[%c0, %c0_0, %c0_1] : memref<2x32x64xf32, #tpu.memory_space<vmem>>, vector<2x8x64xf32>
    tpu.vector_store %arg21[%c0, %c0_0, %c0_1], %0 {strides = array<i32>} : memref<2x32x64xf32, #tpu.memory_space<vmem>>, vector<2x8x64xf32>,
    %c0_2 = arith.constant 0 : index
    %c24 = arith.constant 24 : index
    %c0_3 = arith.constant 0 : index
    %2 = vector.load %arg21[%c0_2, %c24, %c0_3] : memref<2x32x64xf32, #tpu.memory_space<vmem>>, vector<2x8x64xf32>
    tpu.vector_store %arg21[%c0_2, %c24, %c0_3], %0 {strides = array<i32>} : memref<2x32x64xf32, #tpu.memory_space<vmem>>, vector<2x8x64xf32>,
    %c0_4 = arith.constant 0 : index
    %c0_5 = arith.constant 0 : index
    %c0_6 = arith.constant 0 : index
    %3 = vector.load %arg22[%c0_4, %c0_5, %c0_6] : memref<2x32x64xf32, #tpu.memory_space<vmem>>, vector<2x8x64xf32>
    tpu.vector_store %arg22[%c0_4, %c0_5, %c0_6], %0 {strides = array<i32>} : memref<2x32x64xf32, #tpu.memory_space<vmem>>, vector<2x8x64xf32>,
    %c0_7 = arith.constant 0 : index
    %c24_8 = arith.constant 24 : index
    %c0_9 = arith.constant 0 : index
    %4 = vector.load %arg22[%c0_7, %c24_8, %c0_9] : memref<2x32x64xf32, #tpu.memory_space<vmem>>, vector<2x8x64xf32>
    tpu.vector_store %arg22[%c0_7, %c24_8, %c0_9], %0 {strides = array<i32>} : memref<2x32x64xf32, #tpu.memory_space<vmem>>, vector<2x8x64xf32>,
    %c0_10 = arith.constant 0 : index
    %c0_11 = arith.constant 0 : index
    %c0_12 = arith.constant 0 : index
    %5 = vector.load %arg1[%c0_10, %c0_11, %c0_12] : memref<2x16x4xf32, #tpu.memory_space<vmem>>, vector<2x16x4xf32>
    %c0_13 = arith.constant 0 : index
    %c8 = arith.constant 8 : index
    %c0_14 = arith.constant 0 : index
    %6 = vector.load %arg21[%c0_13, %c8, %c0_14] : memref<2x32x64xf32, #tpu.memory_space<vmem>>, vector<2x16x4xf32>
    tpu.vector_store %arg21[%c0_13, %c8, %c0_14], %5 {strides = array<i32>} : memref<2x32x64xf32, #tpu.memory_space<vmem>>, vector<2x16x4xf32>,
    %c0_15 = arith.constant 0 : index
    %c7 = arith.constant 7 : index
    %c0_16 = arith.constant 0 : index
    %7 = vector.load %arg21[%c0_15, %c7, %c0_16] : memref<2x32x64xf32, #tpu.memory_space<vmem>>, vector<2x16x4xf32>
    %c0_17 = arith.constant 0 : index
    %c8_18 = arith.constant 8 : index
    %c0_19 = arith.constant 0 : index
    %8 = vector.load %arg21[%c0_17, %c8_18, %c0_19] : memref<2x32x64xf32, #tpu.memory_space<vmem>>, vector<2x16x4xf32>
    %c0_20 = arith.constant 0 : index
    %c9 = arith.constant 9 : index
    %c0_21 = arith.constant 0 : index
    %9 = vector.load %arg21[%c0_20, %c9, %c0_21] : memref<2x32x64xf32, #tpu.memory_space<vmem>>, vector<2x16x4xf32>
    %10 = tpu.concatenate %7, %8, %9 in 2 : vector<2x16x4xf32>, vector<2x16x4xf32>, vector<2x16x4xf32> -> vector<2x16x12xf32>
    %11 = vector.shape_cast %10 : vector<2x16x12xf32> to vector<32x12xf32>
    %12 = arith.truncf %11 : vector<32x12xf32> to vector<32x12xbf16>
    %c0_22 = arith.constant 0 : index
    %c0_23 = arith.constant 0 : index
    %13 = vector.load %arg2[%c0_22, %c0_23] : memref<12x16xbf16, #tpu.memory_space<vmem>>, vector<12x16xbf16>
    %cst_24 = arith.constant dense<0.000000e+00> : vector<32x16xf32>
    %14 = tpu.matmul %12, %13, %cst_24 {dimension_numbers = #tpu.dot_dimension_numbers<[1], [0], [0], [1], [0, 0, 1, 1], [], []>} : vector<32x12xbf16>, vector<12x16xbf16>, vector<32x16xf32> -> vector<32x16xf32>
    %c0_25 = arith.constant 0 : index
    %c0_26 = arith.constant 0 : index
    %15 = vector.load %arg3[%c0_25, %c0_26] : memref<1x16xf32, #tpu.memory_space<vmem>>, vector<1x16xf32>
    %16 = vector.broadcast %15 : vector<1x16xf32> to vector<32x16xf32>
    %17 = arith.mulf %14, %16 : vector<32x16xf32>
    %c0_27 = arith.constant 0 : index
    %c0_28 = arith.constant 0 : index
    %18 = vector.load %arg4[%c0_27, %c0_28] : memref<1x16xf32, #tpu.memory_space<vmem>>, vector<1x16xf32>
    %19 = vector.broadcast %18 : vector<1x16xf32> to vector<32x16xf32>
    %20 = arith.addf %17, %19 : vector<32x16xf32>
    %cst_29 = arith.constant 0.000000e+00 : f32
    %21 = vector.broadcast %cst_29 : f32 to vector<32x16xf32>
    %22 = arith.cmpf ogt, %20, %21 : vector<32x16xf32>
    %cst_30 = arith.constant 2.000000e-01 : f32
    %23 = vector.broadcast %cst_30 : f32 to vector<32x16xf32>
    %24 = arith.mulf %23, %20 : vector<32x16xf32>
    %25 = arith.select %22, %20, %24 : vector<32x16xi1>, vector<32x16xf32>
    %26 = vector.shape_cast %25 : vector<32x16xf32> to vector<2x16x16xf32>
    %c0_31 = arith.constant 0 : index
    %c8_32 = arith.constant 8 : index
    %c0_33 = arith.constant 0 : index
    %27 = vector.load %arg22[%c0_31, %c8_32, %c0_33] : memref<2x32x64xf32, #tpu.memory_space<vmem>>, vector<2x16x16xf32>
    tpu.vector_store %arg22[%c0_31, %c8_32, %c0_33], %26 {strides = array<i32>} : memref<2x32x64xf32, #tpu.memory_space<vmem>>, vector<2x16x16xf32>,
    %c0_34 = arith.constant 0 : index
    %c7_35 = arith.constant 7 : index
    %c0_36 = arith.constant 0 : index
    %28 = vector.load %arg22[%c0_34, %c7_35, %c0_36] : memref<2x32x64xf32, #tpu.memory_space<vmem>>, vector<2x16x16xf32>
    %c0_37 = arith.constant 0 : index
    %c8_38 = arith.constant 8 : index
    %c0_39 = arith.constant 0 : index
    %29 = vector.load %arg22[%c0_37, %c8_38, %c0_39] : memref<2x32x64xf32, #tpu.memory_space<vmem>>, vector<2x16x16xf32>
    %c0_40 = arith.constant 0 : index
    %c9_41 = arith.constant 9 : index
    %c0_42 = arith.constant 0 : index
    %30 = vector.load %arg22[%c0_40, %c9_41, %c0_42] : memref<2x32x64xf32, #tpu.memory_space<vmem>>, vector<2x16x16xf32>
    %31 = tpu.concatenate %28, %29, %30 in 2 : vector<2x16x16xf32>, vector<2x16x16xf32>, vector<2x16x16xf32> -> vector<2x16x48xf32>
    %32 = vector.shape_cast %31 : vector<2x16x48xf32> to vector<32x48xf32>
    %33 = arith.truncf %32 : vector<32x48xf32> to vector<32x48xbf16>
    %c0_43 = arith.constant 0 : index
    %c0_44 = arith.constant 0 : index
    %34 = vector.load %arg5[%c0_43, %c0_44] : memref<48x32xbf16, #tpu.memory_space<vmem>>, vector<48x32xbf16>
    %cst_45 = arith.constant dense<0.000000e+00> : vector<32x32xf32>
    %35 = tpu.matmul %33, %34, %cst_45 {dimension_numbers = #tpu.dot_dimension_numbers<[1], [0], [0], [1], [0, 0, 1, 1], [], []>} : vector<32x48xbf16>, vector<48x32xbf16>, vector<32x32xf32> -> vector<32x32xf32>
    %c0_46 = arith.constant 0 : index
    %c0_47 = arith.constant 0 : index
    %36 = vector.load %arg6[%c0_46, %c0_47] : memref<1x32xf32, #tpu.memory_space<vmem>>, vector<1x32xf32>
    %37 = vector.broadcast %36 : vector<1x32xf32> to vector<32x32xf32>
    %38 = arith.mulf %35, %37 : vector<32x32xf32>
    %c0_48 = arith.constant 0 : index
    %c0_49 = arith.constant 0 : index
    %39 = vector.load %arg7[%c0_48, %c0_49] : memref<1x32xf32, #tpu.memory_space<vmem>>, vector<1x32xf32>
    %40 = vector.broadcast %39 : vector<1x32xf32> to vector<32x32xf32>
    %41 = arith.addf %38, %40 : vector<32x32xf32>
    %cst_50 = arith.constant 0.000000e+00 : f32
    %42 = vector.broadcast %cst_50 : f32 to vector<32x32xf32>
    %43 = arith.cmpf ogt, %41, %42 : vector<32x32xf32>
    %cst_51 = arith.constant 2.000000e-01 : f32
    %44 = vector.broadcast %cst_51 : f32 to vector<32x32xf32>
    %45 = arith.mulf %44, %41 : vector<32x32xf32>
    %46 = arith.select %43, %41, %45 : vector<32x32xi1>, vector<32x32xf32>
    %47 = vector.shape_cast %46 : vector<32x32xf32> to vector<2x16x32xf32>
    %c0_52 = arith.constant 0 : index
    %c8_53 = arith.constant 8 : index
    %c0_54 = arith.constant 0 : index
    %48 = vector.load %arg21[%c0_52, %c8_53, %c0_54] : memref<2x32x64xf32, #tpu.memory_space<vmem>>, vector<2x16x32xf32>
    tpu.vector_store %arg21[%c0_52, %c8_53, %c0_54], %47 {strides = array<i32>} : memref<2x32x64xf32, #tpu.memory_space<vmem>>, vector<2x16x32xf32>,
    %c0_55 = arith.constant 0 : index
    %c7_56 = arith.constant 7 : index
    %c0_57 = arith.constant 0 : index
    %49 = vector.load %arg21[%c0_55, %c7_56, %c0_57] : memref<2x32x64xf32, #tpu.memory_space<vmem>>, vector<2x16x32xf32>
    %c0_58 = arith.constant 0 : index
    %c8_59 = arith.constant 8 : index
    %c0_60 = arith.constant 0 : index
    %50 = vector.load %arg21[%c0_58, %c8_59, %c0_60] : memref<2x32x64xf32, #tpu.memory_space<vmem>>, vector<2x16x32xf32>
    %c0_61 = arith.constant 0 : index
    %c9_62 = arith.constant 9 : index
    %c0_63 = arith.constant 0 : index
    %51 = vector.load %arg21[%c0_61, %c9_62, %c0_63] : memref<2x32x64xf32, #tpu.memory_space<vmem>>, vector<2x16x32xf32>
    %52 = tpu.concatenate %49, %50, %51 in 2 : vector<2x16x32xf32>, vector<2x16x32xf32>, vector<2x16x32xf32> -> vector<2x16x96xf32>
    %53 = vector.shape_cast %52 : vector<2x16x96xf32> to vector<32x96xf32>
    %54 = arith.truncf %53 : vector<32x96xf32> to vector<32x96xbf16>
    %c0_64 = arith.constant 0 : index
    %c0_65 = arith.constant 0 : index
    %55 = vector.load %arg8[%c0_64, %c0_65] : memref<96x32xbf16, #tpu.memory_space<vmem>>, vector<96x32xbf16>
    %cst_66 = arith.constant dense<0.000000e+00> : vector<32x32xf32>
    %56 = tpu.matmul %54, %55, %cst_66 {dimension_numbers = #tpu.dot_dimension_numbers<[1], [0], [0], [1], [0, 0, 1, 1], [], []>} : vector<32x96xbf16>, vector<96x32xbf16>, vector<32x32xf32> -> vector<32x32xf32>
    %c0_67 = arith.constant 0 : index
    %c0_68 = arith.constant 0 : index
    %57 = vector.load %arg9[%c0_67, %c0_68] : memref<1x32xf32, #tpu.memory_space<vmem>>, vector<1x32xf32>
    %58 = vector.broadcast %57 : vector<1x32xf32> to vector<32x32xf32>
    %59 = arith.mulf %56, %58 : vector<32x32xf32>
    %c0_69 = arith.constant 0 : index
    %c0_70 = arith.constant 0 : index
    %60 = vector.load %arg10[%c0_69, %c0_70] : memref<1x32xf32, #tpu.memory_space<vmem>>, vector<1x32xf32>
    %61 = vector.broadcast %60 : vector<1x32xf32> to vector<32x32xf32>
    %62 = arith.addf %59, %61 : vector<32x32xf32>
    %cst_71 = arith.constant 0.000000e+00 : f32
    %63 = vector.broadcast %cst_71 : f32 to vector<32x32xf32>
    %64 = arith.cmpf ogt, %62, %63 : vector<32x32xf32>
    %cst_72 = arith.constant 2.000000e-01 : f32
    %65 = vector.broadcast %cst_72 : f32 to vector<32x32xf32>
    %66 = arith.mulf %65, %62 : vector<32x32xf32>
    %67 = arith.select %64, %62, %66 : vector<32x32xi1>, vector<32x32xf32>
    %68 = vector.shape_cast %67 : vector<32x32xf32> to vector<2x16x32xf32>
    %c0_73 = arith.constant 0 : index
    %c8_74 = arith.constant 8 : index
    %c0_75 = arith.constant 0 : index
    %69 = vector.load %arg22[%c0_73, %c8_74, %c0_75] : memref<2x32x64xf32, #tpu.memory_space<vmem>>, vector<2x16x32xf32>
    tpu.vector_store %arg22[%c0_73, %c8_74, %c0_75], %68 {strides = array<i32>} : memref<2x32x64xf32, #tpu.memory_space<vmem>>, vector<2x16x32xf32>,
    %c0_76 = arith.constant 0 : index
    %c7_77 = arith.constant 7 : index
    %c0_78 = arith.constant 0 : index
    %70 = vector.load %arg22[%c0_76, %c7_77, %c0_78] : memref<2x32x64xf32, #tpu.memory_space<vmem>>, vector<2x16x32xf32>
    %c0_79 = arith.constant 0 : index
    %c8_80 = arith.constant 8 : index
    %c0_81 = arith.constant 0 : index
    %71 = vector.load %arg22[%c0_79, %c8_80, %c0_81] : memref<2x32x64xf32, #tpu.memory_space<vmem>>, vector<2x16x32xf32>
    %c0_82 = arith.constant 0 : index
    %c9_83 = arith.constant 9 : index
    %c0_84 = arith.constant 0 : index
    %72 = vector.load %arg22[%c0_82, %c9_83, %c0_84] : memref<2x32x64xf32, #tpu.memory_space<vmem>>, vector<2x16x32xf32>
    %73 = tpu.concatenate %70, %71, %72 in 2 : vector<2x16x32xf32>, vector<2x16x32xf32>, vector<2x16x32xf32> -> vector<2x16x96xf32>
    %74 = vector.shape_cast %73 : vector<2x16x96xf32> to vector<32x96xf32>
    %75 = arith.truncf %74 : vector<32x96xf32> to vector<32x96xbf16>
    %c0_85 = arith.constant 0 : index
    %c0_86 = arith.constant 0 : index
    %76 = vector.load %arg11[%c0_85, %c0_86] : memref<96x64xbf16, #tpu.memory_space<vmem>>, vector<96x64xbf16>
    %cst_87 = arith.constant dense<0.000000e+00> : vector<32x64xf32>
    %77 = tpu.matmul %75, %76, %cst_87 {dimension_numbers = #tpu.dot_dimension_numbers<[1], [0], [0], [1], [0, 0, 1, 1], [], []>} : vector<32x96xbf16>, vector<96x64xbf16>, vector<32x64xf32> -> vector<32x64xf32>
    %c0_88 = arith.constant 0 : index
    %c0_89 = arith.constant 0 : index
    %78 = vector.load %arg12[%c0_88, %c0_89] : memref<1x64xf32, #tpu.memory_space<vmem>>, vector<1x64xf32>
    %79 = vector.broadcast %78 : vector<1x64xf32> to vector<32x64xf32>
    %80 = arith.mulf %77, %79 : vector<32x64xf32>
    %c0_90 = arith.constant 0 : index
    %c0_91 = arith.constant 0 : index
    %81 = vector.load %arg13[%c0_90, %c0_91] : memref<1x64xf32, #tpu.memory_space<vmem>>, vector<1x64xf32>
    %82 = vector.broadcast %81 : vector<1x64xf32> to vector<32x64xf32>
    %83 = arith.addf %80, %82 : vector<32x64xf32>
    %cst_92 = arith.constant 0.000000e+00 : f32
    %84 = vector.broadcast %cst_92 : f32 to vector<32x64xf32>
    %85 = arith.cmpf ogt, %83, %84 : vector<32x64xf32>
    %cst_93 = arith.constant 2.000000e-01 : f32
    %86 = vector.broadcast %cst_93 : f32 to vector<32x64xf32>
    %87 = arith.mulf %86, %83 : vector<32x64xf32>
    %88 = arith.select %85, %83, %87 : vector<32x64xi1>, vector<32x64xf32>
    %89 = arith.truncf %88 : vector<32x64xf32> to vector<32x64xbf16>
    %c0_94 = arith.constant 0 : index
    %c0_95 = arith.constant 0 : index
    %90 = vector.load %arg14[%c0_94, %c0_95] : memref<64x96xbf16, #tpu.memory_space<vmem>>, vector<64x96xbf16>
    %cst_96 = arith.constant dense<0.000000e+00> : vector<32x96xf32>
    %91 = tpu.matmul %89, %90, %cst_96 {dimension_numbers = #tpu.dot_dimension_numbers<[1], [0], [0], [1], [0, 0, 1, 1], [], []>} : vector<32x64xbf16>, vector<64x96xbf16>, vector<32x96xf32> -> vector<32x96xf32>
    %c0_97 = arith.constant 0 : index
    %c0_98 = arith.constant 0 : index
    %92 = vector.load %arg16[%c0_97, %c0_98] : memref<1x96xf32, #tpu.memory_space<vmem>>, vector<1x96xf32>
    %93 = vector.broadcast %92 : vector<1x96xf32> to vector<32x96xf32>
    %94 = arith.addf %91, %93 : vector<32x96xf32>
    %c0_99 = arith.constant 0 : index
    %c0_100 = arith.constant 0 : index
    %95 = vector.load %arg15[%c0_99, %c0_100] : memref<32x96xbf16, #tpu.memory_space<vmem>>, vector<32x96xbf16>
    %c0_101 = arith.constant 0 : index
    %c0_102 = arith.constant 0 : index
    %96 = vector.load %arg17[%c0_101, %c0_102] : memref<1x96xf32, #tpu.memory_space<vmem>>, vector<1x96xf32>
    %cst_103 = arith.constant 0.000000e+00 : f32
    %97 = vector.broadcast %cst_103 : f32 to vector<16x32xf32>
    %98 = vector.extract_strided_slice %94 {offsets = [0, 0], sizes = [16, 96], strides = [1, 1]} : vector<32x96xf32> to vector<16x96xf32>
    %99 = arith.truncf %97 : vector<16x32xf32> to vector<16x32xbf16>
    %cst_104 = arith.constant dense<0.000000e+00> : vector<16x96xf32>
    %100 = tpu.matmul %99, %95, %cst_104 {dimension_numbers = #tpu.dot_dimension_numbers<[1], [0], [0], [1], [0, 0, 1, 1], [], []>} : vector<16x32xbf16>, vector<32x96xbf16>, vector<16x96xf32> -> vector<16x96xf32>
    %101 = vector.broadcast %96 : vector<1x96xf32> to vector<16x96xf32>
    %102 = arith.addf %100, %101 : vector<16x96xf32>
    %103 = vector.extract_strided_slice %98 {offsets = [0, 0], sizes = [16, 32], strides = [1, 1]} : vector<16x96xf32> to vector<16x32xf32>
    %104 = vector.extract_strided_slice %102 {offsets = [0, 0], sizes = [16, 32], strides = [1, 1]} : vector<16x96xf32> to vector<16x32xf32>
    %105 = arith.addf %103, %104 : vector<16x32xf32>
    %106 = arith.negf %105 : vector<16x32xf32>
    %107 = math.exp %106 : vector<16x32xf32>
    %cst_105 = arith.constant 1.000000e+00 : f32
    %108 = vector.broadcast %cst_105 : f32 to vector<16x32xf32>
    %109 = arith.addf %108, %107 : vector<16x32xf32>
    %110 = arith.divf %108, %109 : vector<16x32xf32>
    %111 = vector.extract_strided_slice %98 {offsets = [0, 32], sizes = [16, 32], strides = [1, 1]} : vector<16x96xf32> to vector<16x32xf32>
    %112 = vector.extract_strided_slice %102 {offsets = [0, 32], sizes = [16, 32], strides = [1, 1]} : vector<16x96xf32> to vector<16x32xf32>
    %113 = arith.addf %111, %112 : vector<16x32xf32>
    %114 = arith.negf %113 : vector<16x32xf32>
    %115 = math.exp %114 : vector<16x32xf32>
    %cst_106 = arith.constant 1.000000e+00 : f32
    %116 = vector.broadcast %cst_106 : f32 to vector<16x32xf32>
    %117 = arith.addf %116, %115 : vector<16x32xf32>
    %118 = arith.divf %116, %117 : vector<16x32xf32>
    %119 = vector.extract_strided_slice %98 {offsets = [0, 64], sizes = [16, 32], strides = [1, 1]} : vector<16x96xf32> to vector<16x32xf32>
    %120 = vector.extract_strided_slice %102 {offsets = [0, 64], sizes = [16, 32], strides = [1, 1]} : vector<16x96xf32> to vector<16x32xf32>
    %121 = arith.mulf %110, %120 : vector<16x32xf32>
    %122 = arith.addf %119, %121 : vector<16x32xf32>
    %123 = math.tanh %122 : vector<16x32xf32>
    %cst_107 = arith.constant 1.000000e+00 : f32
    %124 = vector.broadcast %cst_107 : f32 to vector<16x32xf32>
    %125 = arith.subf %124, %118 : vector<16x32xf32>
    %126 = arith.mulf %125, %123 : vector<16x32xf32>
    %127 = arith.mulf %118, %97 : vector<16x32xf32>
    %128 = arith.addf %126, %127 : vector<16x32xf32>
    %c0_108 = arith.constant 0 : index
    %c0_109 = arith.constant 0 : index
    %c0_110 = arith.constant 0 : index
    %129 = vector.load %arg23[%c0_108, %c0_109, %c0_110] : memref<2x16x32xf32, #tpu.memory_space<vmem>>, vector<1x16x32xf32>
    %130 = vector.shape_cast %129 : vector<1x16x32xf32> to vector<16x32xf32>
    %131 = vector.shape_cast %128 : vector<16x32xf32> to vector<1x16x32xf32>
    tpu.vector_store %arg23[%c0_108, %c0_109, %c0_110], %131 {strides = array<i32>} : memref<2x16x32xf32, #tpu.memory_space<vmem>>, vector<1x16x32xf32>,
    %132 = vector.extract_strided_slice %94 {offsets = [16, 0], sizes = [16, 96], strides = [1, 1]} : vector<32x96xf32> to vector<16x96xf32>
    %133 = arith.truncf %128 : vector<16x32xf32> to vector<16x32xbf16>
    %cst_111 = arith.constant dense<0.000000e+00> : vector<16x96xf32>
    %134 = tpu.matmul %133, %95, %cst_111 {dimension_numbers = #tpu.dot_dimension_numbers<[1], [0], [0], [1], [0, 0, 1, 1], [], []>} : vector<16x32xbf16>, vector<32x96xbf16>, vector<16x96xf32> -> vector<16x96xf32>
    %135 = vector.broadcast %96 : vector<1x96xf32> to vector<16x96xf32>
    %136 = arith.addf %134, %135 : vector<16x96xf32>
    %137 = vector.extract_strided_slice %132 {offsets = [0, 0], sizes = [16, 32], strides = [1, 1]} : vector<16x96xf32> to vector<16x32xf32>
    %138 = vector.extract_strided_slice %136 {offsets = [0, 0], sizes = [16, 32], strides = [1, 1]} : vector<16x96xf32> to vector<16x32xf32>
    %139 = arith.addf %137, %138 : vector<16x32xf32>
    %140 = arith.negf %139 : vector<16x32xf32>
    %141 = math.exp %140 : vector<16x32xf32>
    %cst_112 = arith.constant 1.000000e+00 : f32
    %142 = vector.broadcast %cst_112 : f32 to vector<16x32xf32>
    %143 = arith.addf %142, %141 : vector<16x32xf32>
    %144 = arith.divf %142, %143 : vector<16x32xf32>
    %145 = vector.extract_strided_slice %132 {offsets = [0, 32], sizes = [16, 32], strides = [1, 1]} : vector<16x96xf32> to vector<16x32xf32>
    %146 = vector.extract_strided_slice %136 {offsets = [0, 32], sizes = [16, 32], strides = [1, 1]} : vector<16x96xf32> to vector<16x32xf32>
    %147 = arith.addf %145, %146 : vector<16x32xf32>
    %148 = arith.negf %147 : vector<16x32xf32>
    %149 = math.exp %148 : vector<16x32xf32>
    %cst_113 = arith.constant 1.000000e+00 : f32
    %150 = vector.broadcast %cst_113 : f32 to vector<16x32xf32>
    %151 = arith.addf %150, %149 : vector<16x32xf32>
    %152 = arith.divf %150, %151 : vector<16x32xf32>
    %153 = vector.extract_strided_slice %132 {offsets = [0, 64], sizes = [16, 32], strides = [1, 1]} : vector<16x96xf32> to vector<16x32xf32>
    %154 = vector.extract_strided_slice %136 {offsets = [0, 64], sizes = [16, 32], strides = [1, 1]} : vector<16x96xf32> to vector<16x32xf32>
    %155 = arith.mulf %144, %154 : vector<16x32xf32>
    %156 = arith.addf %153, %155 : vector<16x32xf32>
    %157 = math.tanh %156 : vector<16x32xf32>
    %cst_114 = arith.constant 1.000000e+00 : f32
    %158 = vector.broadcast %cst_114 : f32 to vector<16x32xf32>
    %159 = arith.subf %158, %152 : vector<16x32xf32>
    %160 = arith.mulf %159, %157 : vector<16x32xf32>
    %161 = arith.mulf %152, %128 : vector<16x32xf32>
    %162 = arith.addf %160, %161 : vector<16x32xf32>
    %c1 = arith.constant 1 : index
    %c0_115 = arith.constant 0 : index
    %c0_116 = arith.constant 0 : index
    %163 = vector.load %arg23[%c1, %c0_115, %c0_116] : memref<2x16x32xf32, #tpu.memory_space<vmem>>, vector<1x16x32xf32>
    %164 = vector.shape_cast %163 : vector<1x16x32xf32> to vector<16x32xf32>
    %165 = vector.shape_cast %162 : vector<16x32xf32> to vector<1x16x32xf32>
    tpu.vector_store %arg23[%c1, %c0_115, %c0_116], %165 {strides = array<i32>} : memref<2x16x32xf32, #tpu.memory_space<vmem>>, vector<1x16x32xf32>,
    %c0_117 = arith.constant 0 : index
    %c0_118 = arith.constant 0 : index
    %c0_119 = arith.constant 0 : index
    %166 = vector.load %arg23[%c0_117, %c0_118, %c0_119] : memref<2x16x32xf32, #tpu.memory_space<vmem>>, vector<2x16x32xf32>
    %167 = vector.shape_cast %166 : vector<2x16x32xf32> to vector<32x32xf32>
    %168 = arith.truncf %167 : vector<32x32xf32> to vector<32x32xbf16>
    %c0_120 = arith.constant 0 : index
    %c0_121 = arith.constant 0 : index
    %169 = vector.load %arg18[%c0_120, %c0_121] : memref<32x8xbf16, #tpu.memory_space<vmem>>, vector<32x8xbf16>
    %cst_122 = arith.constant dense<0.000000e+00> : vector<32x8xf32>
    %170 = tpu.matmul %168, %169, %cst_122 {dimension_numbers = #tpu.dot_dimension_numbers<[1], [0], [0], [1], [0, 0, 1, 1], [], []>} : vector<32x32xbf16>, vector<32x8xbf16>, vector<32x8xf32> -> vector<32x8xf32>
    %c0_123 = arith.constant 0 : index
    %c0_124 = arith.constant 0 : index
    %171 = vector.load %arg19[%c0_123, %c0_124] : memref<1x8xf32, #tpu.memory_space<vmem>>, vector<1x8xf32>
    %172 = vector.broadcast %171 : vector<1x8xf32> to vector<32x8xf32>
    %173 = arith.addf %170, %172 : vector<32x8xf32>
    %174 = vector.shape_cast %173 : vector<32x8xf32> to vector<2x16x8xf32>
    %c0_125 = arith.constant 0 : index
    %c0_126 = arith.constant 0 : index
    %c0_127 = arith.constant 0 : index
    %175 = vector.load %arg20[%c0_125, %c0_126, %c0_127] : memref<2x16x8xf32, #tpu.memory_space<vmem>>, vector<2x16x8xf32>
    tpu.vector_store %arg20[%c0_125, %c0_126, %c0_127], %174 {strides = array<i32>} : memref<2x16x8xf32, #tpu.memory_space<vmem>>, vector<2x16x8xf32>,
    return
  }
  func.func @transform_0(%arg0: i32) -> (i32, i32, i32) {
    %c0_i32 = arith.constant 0 : i32
    %c0_i32_0 = arith.constant 0 : i32
    %c0_i32_1 = arith.constant 0 : i32
    %c0_i32_2 = arith.constant 0 : i32
    return %c0_i32, %c0_i32_0, %c0_i32_1 : i32, i32, i32
  }
  func.func @transform_1(%arg0: i32) -> (i32, i32) {
    %c0_i32 = arith.constant 0 : i32
    %c0_i32_0 = arith.constant 0 : i32
    %c0_i32_1 = arith.constant 0 : i32
    return %c0_i32, %c0_i32_0 : i32, i32
  }
  func.func @transform_2(%arg0: i32) -> (i32, i32) {
    %c0_i32 = arith.constant 0 : i32
    %c0_i32_0 = arith.constant 0 : i32
    %c0_i32_1 = arith.constant 0 : i32
    return %c0_i32, %c0_i32_0 : i32, i32
  }
  func.func @transform_3(%arg0: i32) -> (i32, i32) {
    %c0_i32 = arith.constant 0 : i32
    %c0_i32_0 = arith.constant 0 : i32
    %c0_i32_1 = arith.constant 0 : i32
    return %c0_i32, %c0_i32_0 : i32, i32
  }
  func.func @transform_4(%arg0: i32) -> (i32, i32) {
    %c0_i32 = arith.constant 0 : i32
    %c0_i32_0 = arith.constant 0 : i32
    %c0_i32_1 = arith.constant 0 : i32
    return %c0_i32, %c0_i32_0 : i32, i32
  }
  func.func @transform_5(%arg0: i32) -> (i32, i32) {
    %c0_i32 = arith.constant 0 : i32
    %c0_i32_0 = arith.constant 0 : i32
    %c0_i32_1 = arith.constant 0 : i32
    return %c0_i32, %c0_i32_0 : i32, i32
  }
  func.func @transform_6(%arg0: i32) -> (i32, i32) {
    %c0_i32 = arith.constant 0 : i32
    %c0_i32_0 = arith.constant 0 : i32
    %c0_i32_1 = arith.constant 0 : i32
    return %c0_i32, %c0_i32_0 : i32, i32
  }
  func.func @transform_7(%arg0: i32) -> (i32, i32) {
    %c0_i32 = arith.constant 0 : i32
    %c0_i32_0 = arith.constant 0 : i32
    %c0_i32_1 = arith.constant 0 : i32
    return %c0_i32, %c0_i32_0 : i32, i32
  }
  func.func @transform_8(%arg0: i32) -> (i32, i32) {
    %c0_i32 = arith.constant 0 : i32
    %c0_i32_0 = arith.constant 0 : i32
    %c0_i32_1 = arith.constant 0 : i32
    return %c0_i32, %c0_i32_0 : i32, i32
  }
  func.func @transform_9(%arg0: i32) -> (i32, i32) {
    %c0_i32 = arith.constant 0 : i32
    %c0_i32_0 = arith.constant 0 : i32
    %c0_i32_1 = arith.constant 0 : i32
    return %c0_i32, %c0_i32_0 : i32, i32
  }
  func.func @transform_10(%arg0: i32) -> (i32, i32) {
    %c0_i32 = arith.constant 0 : i32
    %c0_i32_0 = arith.constant 0 : i32
    %c0_i32_1 = arith.constant 0 : i32
    return %c0_i32, %c0_i32_0 : i32, i32
  }
  func.func @transform_11(%arg0: i32) -> (i32, i32) {
    %c0_i32 = arith.constant 0 : i32
    %c0_i32_0 = arith.constant 0 : i32
    %c0_i32_1 = arith.constant 0 : i32
    return %c0_i32, %c0_i32_0 : i32, i32
  }
  func.func @transform_12(%arg0: i32) -> (i32, i32) {
    %c0_i32 = arith.constant 0 : i32
    %c0_i32_0 = arith.constant 0 : i32
    %c0_i32_1 = arith.constant 0 : i32
    return %c0_i32, %c0_i32_0 : i32, i32
  }
  func.func @transform_13(%arg0: i32) -> (i32, i32) {
    %c0_i32 = arith.constant 0 : i32
    %c0_i32_0 = arith.constant 0 : i32
    %c0_i32_1 = arith.constant 0 : i32
    return %c0_i32, %c0_i32_0 : i32, i32
  }
  func.func @transform_14(%arg0: i32) -> (i32, i32) {
    %c0_i32 = arith.constant 0 : i32
    %c0_i32_0 = arith.constant 0 : i32
    %c0_i32_1 = arith.constant 0 : i32
    return %c0_i32, %c0_i32_0 : i32, i32
  }
  func.func @transform_15(%arg0: i32) -> (i32, i32) {
    %c0_i32 = arith.constant 0 : i32
    %c0_i32_0 = arith.constant 0 : i32
    %c0_i32_1 = arith.constant 0 : i32
    return %c0_i32, %c0_i32_0 : i32, i32
  }
  func.func @transform_16(%arg0: i32) -> (i32, i32) {
    %c0_i32 = arith.constant 0 : i32
    %c0_i32_0 = arith.constant 0 : i32
    %c0_i32_1 = arith.constant 0 : i32
    return %c0_i32, %c0_i32_0 : i32, i32
  }
  func.func @transform_17(%arg0: i32) -> (i32, i32) {
    %c0_i32 = arith.constant 0 : i32
    %c0_i32_0 = arith.constant 0 : i32
    %c0_i32_1 = arith.constant 0 : i32
    return %c0_i32, %c0_i32_0 : i32, i32
  }
  func.func @transform_18(%arg0: i32) -> (i32, i32) {
    %c0_i32 = arith.constant 0 : i32
    %c0_i32_0 = arith.constant 0 : i32
    %c0_i32_1 = arith.constant 0 : i32
    return %c0_i32, %c0_i32_0 : i32, i32
  }
  func.func @transform_19(%arg0: i32) -> (i32, i32, i32) {
    %c0_i32 = arith.constant 0 : i32
    %c0_i32_0 = arith.constant 0 : i32
    %c0_i32_1 = arith.constant 0 : i32
    %c0_i32_2 = arith.constant 0 : i32
    return %c0_i32, %c0_i32_0, %c0_i32_1 : i32, i32, i32
  }
}

</mosaic_0001>

<bundles_post_ra>
// kernel: crnn_forward.1
= control target key start
LH: loop header
LB: loop body
LE: loop exit
PB: predicated region body
PF: predicated region fallthrough
CT: control target
= control target key end

     0   :  { %vm76_vm0 = vcmask 31744   ;;  %vm63_vm1 = vcmask 523264   ;;  %v1544_v2 = vmov 0.0   ;;  %vm150_vm2 = vcmask 1045504   ;;  %s1545_s27 = smov 4   ;;  %s1546_s28 = smov 8   ;;  %s1920_s0 = inlined_call_operand.vmem [shape: f32[2,16,4], index: 0, kind: input, shape index: {}]   ;;  %s1921_s1 = inlined_call_operand.vmem [shape: bf16[12,16], index: 1, kind: input, shape index: {}]   ;;  %s1922_s2 = inlined_call_operand.vmem [shape: f32[1,16], index: 2, kind: input, shape index: {}]   ;;  %s1923_s3 = inlined_call_operand.vmem [shape: f32[1,16], index: 3, kind: input, shape index: {}]   ;;  %s1924_s4 = inlined_call_operand.vmem [shape: bf16[48,32], index: 4, kind: input, shape index: {}]   ;;  %s1925_s7 = inlined_call_operand.vmem [shape: bf16[96,32], index: 7, kind: input, shape index: {}]   ;;  %s1926_s5 = inlined_call_operand.vmem [shape: f32[1,32], index: 5, kind: input, shape index: {}]   ;;  %s1927_s6 = inlined_call_operand.vmem [shape: f32[1,32], index: 6, kind: input, shape index: {}]   ;;  %s1928_s10 = inlined_call_operand.vmem [shape: bf16[96,64], index: 10, kind: input, shape index: {}]   ;;  %s1929_s8 = inlined_call_operand.vmem [shape: f32[1,32], index: 8, kind: input, shape index: {}]   ;;  %s1930_s9 = inlined_call_operand.vmem [shape: f32[1,32], index: 9, kind: input, shape index: {}]   ;;  %s1931_s14 = inlined_call_operand.vmem [shape: bf16[32,96], index: 14, kind: input, shape index: {}]   ;;  %s1932_s13 = inlined_call_operand.vmem [shape: bf16[64,96], index: 13, kind: input, shape index: {}]   ;;  %s1933_s11 = inlined_call_operand.vmem [shape: f32[1,64], index: 11, kind: input, shape index: {}]   ;;  %s1934_s12 = inlined_call_operand.vmem [shape: f32[1,64], index: 12, kind: input, shape index: {}]   ;;  %s1935_s16 = inlined_call_operand.vmem [shape: f32[1,96], index: 16, kind: input, shape index: {}]   ;;  %s1936_s15 = inlined_call_operand.vmem [shape: f32[1,96], index: 15, kind: input, shape index: {}]   ;;  %s1937_s17 = inlined_call_operand.vmem [shape: bf16[32,8], index: 17, kind: input, shape index: {}]   ;;  %s1938_s18 = inlined_call_operand.vmem [shape: f32[1,8], index: 18, kind: input, shape index: {}]   ;;  %s1939_s19 = inlined_call_operand.vmem [shape: f32[2,16,8], index: 19, kind: output, shape index: {}]  }
   0x1   :  { %1941 = sst [smem:[#allocation5_spill]] %s1920_s0  ;;  %66 = vst.msk [vmem:[#allocation2 + $0x18] sm:$0xff] %vm63_vm1, %v1544_v2  ;;  %64 = vst.msk [vmem:[#allocation2] sm:$0xff] %vm63_vm1, %v1544_v2  ;;  %vm129_vm3 = vcmask 64512   ;;  %vm143_vm4 = vcmask 97280   ;;  %vm237_vm5 = vcmask 130048  }
   0x2   :  { %1942 = sst [smem:[#allocation6_spill]] %s1921_s1  ;;  %65 = vst.msk [vmem:[#allocation2 + $0x20] sm:$0xff] %vm63_vm1, %v1544_v2  ;;  %67 = vst.msk [vmem:[#allocation2 + $0x38] sm:$0xff] %vm63_vm1, %v1544_v2  ;;  %v1497_v61 = vld [vmem:[%s1924_s4 + $0x10] sm:$0xff]   ;;  %vm290_vm10 = vcmask 261120   ;;  %vm321_vm11 = vcmask 392192  }
   0x3   :  { %1943 = sst [smem:[#allocation7_spill]] %s1922_s2  ;;  %68 = vst.msk [vmem:[#allocation3] sm:$0xff] %vm63_vm1, %v1544_v2  ;;  %69 = vst.msk [vmem:[#allocation3 + $0x20] sm:$0xff] %vm63_vm1, %v1544_v2  ;;  %1328 = vmatprep.subr.bf16.mxu1 %v1497_v61 }
   0x4   :  { %1944 = sst [smem:[#allocation8_spill]] %s1923_s3  ;;  %70 = vst.msk [vmem:[#allocation3 + $0x18] sm:$0xff] %vm63_vm1, %v1544_v2  ;;  %71 = vst.msk [vmem:[#allocation3 + $0x38] sm:$0xff] %vm63_vm1, %v1544_v2  ;;  %1329 = vmatpush3.bf16.msra.mxu1 %v1497_v61 }
   0x5   :  { %s1945_s20 = sld [smem:[#allocation5_spill]] }
   0x6   :  { %s1946_s26 = sld [smem:[#allocation6_spill]] }
   0x7   :  { %s1947_s30 = sld [smem:[#allocation7_spill]] }
   0x8   :  { %s1948_s1 = sld [smem:[#allocation8_spill]] }
   0xb   :  { %v72_v0 = vld [vmem:[%s1945_s20] sm:$0xff]  ;;  %v73_v1 = vld [vmem:[%s1945_s20 + $0x8] sm:$0xff]  ;;  %v74_v3 = vld [vmem:[%s1945_s20 + $0x10] sm:$0xff] }
   0xc   :  { %77 = vst.msk [vmem:[#allocation2 + $0x8] sm:$0xff] %vm76_vm0, %v72_v0  ;;  %78 = vst.msk [vmem:[#allocation2 + $0x10] sm:$0xff] %vm76_vm0, %v73_v1  ;;  %v75_v4 = vld [vmem:[%s1945_s20 + $0x18] sm:$0xff]  ;;  %v1496_v5 = vld [vmem:[%s1946_s26] sm:$0x3f]   ;;  %s1547_s26 = smov 16  }
   0xd   :  { %79 = vst.msk [vmem:[#allocation2 + $0x28] sm:$0xff] %vm76_vm0, %v74_v3  ;;  %80 = vst.msk [vmem:[#allocation2 + $0x30] sm:$0xff] %vm76_vm0, %v75_v4  ;;  %1406 = vmatprep.subr.msk.bf16.mxu0 %vm150_vm2, %v1496_v5  ;;  %v152_v6 = vsel %vm150_vm2, %v1496_v5, 0  ;;  %v1233_v45 = vld [vmem:[%s1947_s30] ss:$0 sm:$0xff]  ;;  %v1498_v4 = vld [vmem:[%s1924_s4 + $0x8] sm:$0xff]  }
   0xe   :  { %1323 = vmatpush3.bf16.msra.mxu0 %v152_v6  ;;  %v1234_v47 = vld [vmem:[%s1948_s1] ss:$0 sm:$0xff]  ;;  %1330 = vmatprep.subr.bf16.mxu1 %v1498_v4 }
   0xf   :  { %1331 = vmatpush3.bf16.msra.mxu1 %v1498_v4  ;;  %v1499_v6 = vld [vmem:[%s1924_s4] sm:$0xff]  }
  0x10   :  { %1332 = vmatprep.subr.bf16.mxu1 %v1499_v6 }
  0x13   :  { %v85_v7 = vld [vmem:[#allocation2 + $0x8] sm:$0xff]  ;;  %v86_v8 = vld [vmem:[#allocation2 + $0x10] sm:$0xff]  ;;  %1333 = vmatpush3.bf16.msra.mxu1 %v1499_v6 }
  0x14   :  { %v89_v9 = vld [vmem:[#allocation2 + $0x9] sm:$0xff]  ;;  %v1416_v10 = vpack.i.bf16 %v86_v8, %v85_v7  ;;  %v90_v11 = vld [vmem:[#allocation2 + $0x11] sm:$0xff] }
  0x15   :  { %v87_v12 = vld [vmem:[#allocation2 + $0x28] sm:$0xff]  ;;  %v88_v13 = vld [vmem:[#allocation2 + $0x30] sm:$0xff]  ;;  %v1426_v14 = vpack.i.bf16 %v90_v11, %v89_v9 }
  0x16   :  { %v91_v15 = vld [vmem:[#allocation2 + $0x29] sm:$0xff]  ;;  %v92_v16 = vld [vmem:[#allocation2 + $0x31] sm:$0xff]  ;;  %1417 = vrot.lane.b32.xlu0 %v1416_v10, %s1545_s27  ;;  %v1421_v17 = vpack.i.bf16 %v88_v13, %v87_v12 }
  0x17   :  { %1427 = vrot.lane.b32.xlu1 %v1426_v14, %s1546_s28  ;;  %v1431_v18 = vpack.i.bf16 %v92_v16, %v91_v15  ;;  %v81_v20 = vld [vmem:[#allocation2 + $0x7] sm:$0xff]  ;;  %v82_v21 = vld [vmem:[#allocation2 + $0xf] sm:$0xff] }
  0x18   :  { %v83_v29 = vld [vmem:[#allocation2 + $0x27] sm:$0xff]  ;;  %v84_v30 = vld [vmem:[#allocation2 + $0x2f] sm:$0xff] }
  0x1a   :  { %1422 = vrot.lane.b32.xlu0 %v1421_v17, %s1545_s27  ;;  %s1548_s27 = smov 32  }
  0x1b   :  { %1432 = vrot.lane.b32.xlu1 %v1431_v18, %s1546_s28 }
  0x88   :  { %v1418_v19 = vpop.permute.xlu0 %1417 }
  0x89   :  { %v1420_v22 = vunpack.i.h.bf16 %v1418_v19  ;;  %v1419_v23 = vunpack.i.l.bf16 %v1418_v19  ;;  %v1428_v24 = vpop.permute.xlu1 %1427 }
  0x8a   :  { %v1430_v25 = vunpack.i.h.bf16 %v1428_v24  ;;  %v1429_v26 = vunpack.i.l.bf16 %v1428_v24 }
  0x8b   :  { %v125_v27 = vsel %vm76_vm0, %v81_v20, %v1419_v23  ;;  %v126_v28 = vsel %vm76_vm0, %v82_v21, %v1420_v22 }
  0x8c   :  { %v1423_v31 = vpop.permute.xlu0 %1422  ;;  %v130_v32 = vsel %vm129_vm3, %v125_v27, %v1429_v26  ;;  %v131_v33 = vsel %vm129_vm3, %v126_v28, %v1430_v25 }
  0x8d   :  { %v1425_v34 = vunpack.i.h.bf16 %v1423_v31  ;;  %v1424_v35 = vunpack.i.l.bf16 %v1423_v31  ;;  %v1433_v36 = vpop.permute.xlu1 %1432  ;;  %v134_v37 = vpack.c.bf16 %v131_v33, %v130_v32 }
  0x8e   :  { %v1435_v38 = vunpack.i.h.bf16 %v1433_v36  ;;  %v1434_v39 = vunpack.i.l.bf16 %v1433_v36 }
  0x8f   :  { %v128_v40 = vsel %vm76_vm0, %v84_v30, %v1425_v34  ;;  %v127_v41 = vsel %vm76_vm0, %v83_v29, %v1424_v35  ;;  %1324 = vmatprep.mubr.msk.bf16.mxu0 %vm143_vm4, %v134_v37  ;;  %vm517_vm0 = vcmask 785408  }
  0x90   :  { %v132_v42 = vsel %vm129_vm3, %v127_v41, %v1434_v39  ;;  %v133_v43 = vsel %vm129_vm3, %v128_v40, %v1435_v38 }
  0x91   :  { %v135_v44 = vpack.c.bf16 %v133_v43, %v132_v42 }
  0x93   :  { %1325 = vmatmul.mubr.msk.bf16.vlgmr.msra.gmra.mxu0 %vm143_vm4, %v135_v44 }
 0x153   :  { %v1326_v46 = vpop.f32.mrf.mxu0 }
 0x154   :  { %v212_v48 = vmul.f32 %v1326_v46, %v1233_v45  ;;  %v1501_v46 = vld [vmem:[%s1925_s7 + $0x20] sm:$0xff]  }
 0x155   :  { %v188_v49 = vpop.f32.mrf.mxu0 }
 0x156   :  { %v223_v50 = vadd.f32 %v1234_v47, %v212_v48  ;;  %v210_v51 = vmul.f32 %v1233_v45, %v188_v49  ;;  %v1240_v48 = vld [vmem:[%s1926_s5] ss:$0 sm:$0xff] }
 0x157   :  { %v1327_v52 = vpop.f32.mrf.mxu0 }
 0x158   :  { %vm227_vm6 = vcmp.gt.f32.partialorder %v223_v50, 0.0  ;;  %v231_v53 = vmul.f32 0.2, %v223_v50  ;;  %v221_v54 = vadd.f32 %v1234_v47, %v210_v51  ;;  %v213_v55 = vmul.f32 %v1327_v52, %v1233_v45 }
 0x159   :  { %v191_v56 = vpop.f32.mrf.mxu0 }
 0x15a   :  { %v235_v57 = vsel %vm227_vm6, %v223_v50, %v231_v53  ;;  %vm225_vm7 = vcmp.gt.f32.partialorder %v221_v54, 0.0  ;;  %v229_v58 = vmul.f32 0.2, %v221_v54  ;;  %v224_v59 = vadd.f32 %v1234_v47, %v213_v55  ;;  %v1241_v50 = vld [vmem:[%s1927_s6] ss:$0 sm:$0xff] }
 0x15b   :  { %240 = vst.msk [vmem:[#allocation3 + $0x28] sm:$0xff] %vm237_vm5, %v235_v57  ;;  %v211_v60 = vmul.f32 %v1233_v45, %v191_v56  ;;  %v1500_v45 = vld [vmem:[%s1925_s7 + $0x28] sm:$0xff]  }
 0x15c   :  { %v233_v62 = vsel %vm225_vm7, %v221_v54, %v229_v58  ;;  %vm228_vm8 = vcmp.gt.f32.partialorder %v224_v59, 0.0  ;;  %v232_v63 = vmul.f32 0.2, %v224_v59  ;;  %1338 = vmatprep.subr.bf16.mxu0 %v1500_v45  ;;  %vm1550_vm7 = vmmov 0  }
 0x15d   :  { %238 = vst.msk [vmem:[#allocation3 + $0x8] sm:$0xff] %vm237_vm5, %v233_v62  ;;  %v222_v0 = vadd.f32 %v1234_v47, %v211_v60  ;;  %v1502_v47 = vld [vmem:[%s1925_s7 + $0x18] sm:$0xff]   ;;  %1339 = vmatpush3.bf16.msra.mxu0 %v1500_v45 }
 0x15e   :  { %v236_v1 = vsel %vm228_vm8, %v224_v59, %v232_v63  ;;  %1340 = vmatprep.subr.bf16.mxu0 %v1501_v46 }
 0x15f   :  { %241 = vst.msk [vmem:[#allocation3 + $0x30] sm:$0xff] %vm237_vm5, %v236_v1  ;;  %vm226_vm9 = vcmp.gt.f32.partialorder %v222_v0, 0.0  ;;  %v230_v3 = vmul.f32 0.2, %v222_v0 }
 0x161   :  { %v234_v5 = vsel %vm226_vm9, %v222_v0, %v230_v3  ;;  %1341 = vmatpush3.bf16.msra.mxu0 %v1501_v46  ;;  %v1503_v0 = vld [vmem:[%s1925_s7 + $0x10] sm:$0xff]  }
 0x162   :  { %239 = vst.msk [vmem:[#allocation3 + $0x10] sm:$0xff] %vm237_vm5, %v234_v5  ;;  %v248_v7 = vld [vmem:[#allocation3 + $0x28] sm:$0xff]  ;;  %1342 = vmatprep.subr.bf16.mxu0 %v1502_v47 }
 0x163   :  { %v244_v28 = vld [vmem:[#allocation3 + $0x27] sm:$0xff] }
 0x164   :  { %v246_v12 = vld [vmem:[#allocation3 + $0x8] sm:$0xff] }
 0x165   :  { %v242_v35 = vld [vmem:[#allocation3 + $0x7] sm:$0xff]  ;;  %1343 = vmatpush3.bf16.msra.mxu0 %v1502_v47 }
 0x166   :  { %v249_v8 = vld [vmem:[#allocation3 + $0x30] sm:$0xff]  ;;  %1344 = vmatprep.subr.bf16.mxu0 %v1503_v0 }
 0x167   :  { %v1436_v9 = vpack.i.bf16 %v249_v8, %v248_v7  ;;  %v252_v10 = vld [vmem:[#allocation3 + $0x29] sm:$0xff]  ;;  %v253_v11 = vld [vmem:[#allocation3 + $0x31] sm:$0xff] }
 0x168   :  { %v1451_v15 = vpack.i.bf16 %v253_v11, %v252_v10  ;;  %v245_v29 = vld [vmem:[#allocation3 + $0x2f] sm:$0xff] }
 0x169   :  { %1437 = vrot.lane.b32.xlu1 %v1436_v9, %s1547_s26  ;;  %v247_v13 = vld [vmem:[#allocation3 + $0x10] sm:$0xff]  ;;  %1345 = vmatpush3.bf16.msra.mxu0 %v1503_v0  ;;  %v1504_v7 = vld [vmem:[%s1925_s7 + $0x8] sm:$0xff]   ;;  %v1505_v9 = vld [vmem:[%s1925_s7] sm:$0xff]  }
 0x16a   :  { %v1441_v14 = vpack.i.bf16 %v247_v13, %v246_v12  ;;  %v250_v16 = vld [vmem:[#allocation3 + $0x9] sm:$0xff]  ;;  %v251_v17 = vld [vmem:[#allocation3 + $0x11] sm:$0xff]  ;;  %1346 = vmatprep.subr.bf16.mxu0 %v1504_v7 }
 0x16b   :  { %v1446_v18 = vpack.i.bf16 %v251_v17, %v250_v16  ;;  %v243_v36 = vld [vmem:[#allocation3 + $0xf] sm:$0xff] }
 0x16c   :  { %1442 = vrot.lane.b32.xlu0 %v1441_v14, %s1547_s26  ;;  %s1549_s26 = smov 64  }
 0x16d   :  { %1452 = vrot.lane.b32.xlu1 %v1451_v15, %s1548_s27  ;;  %1347 = vmatpush3.bf16.msra.mxu0 %v1504_v7 }
 0x16e   :  { %1348 = vmatprep.subr.bf16.mxu0 %v1505_v9 }
 0x170   :  { %1447 = vrot.lane.b32.xlu0 %v1446_v18, %s1548_s27 }
 0x171   :  { %1349 = vmatpush3.bf16.msra.mxu0 %v1505_v9 }
 0x1db   :  { %v1438_v19 = vpop.permute.xlu1 %1437 }
 0x1dc   :  { %v1440_v21 = vunpack.i.h.bf16 %v1438_v19  ;;  %v1439_v22 = vunpack.i.l.bf16 %v1438_v19 }
 0x1de   :  { %v1443_v20 = vpop.permute.xlu0 %1442  ;;  %v288_v31 = vsel %vm237_vm5, %v244_v28, %v1439_v22  ;;  %v289_v32 = vsel %vm237_vm5, %v245_v29, %v1440_v21 }
 0x1df   :  { %v1453_v23 = vpop.permute.xlu1 %1452  ;;  %v1445_v24 = vunpack.i.h.bf16 %v1443_v20  ;;  %v1444_v25 = vunpack.i.l.bf16 %v1443_v20 }
 0x1e0   :  { %v1455_v26 = vunpack.i.h.bf16 %v1453_v23  ;;  %v1454_v27 = vunpack.i.l.bf16 %v1453_v23 }
 0x1e1   :  { %v286_v39 = vsel %vm237_vm5, %v242_v35, %v1444_v25  ;;  %v287_v40 = vsel %vm237_vm5, %v243_v36, %v1445_v24 }
 0x1e2   :  { %v1448_v30 = vpop.permute.xlu0 %1447  ;;  %v293_v37 = vsel %vm290_vm10, %v288_v31, %v1454_v27  ;;  %v294_v38 = vsel %vm290_vm10, %v289_v32, %v1455_v26 }
 0x1e3   :  { %v1450_v33 = vunpack.i.h.bf16 %v1448_v30  ;;  %v1449_v34 = vunpack.i.l.bf16 %v1448_v30  ;;  %v296_v44 = vpack.c.bf16 %v294_v38, %v293_v37 }
 0x1e5   :  { %v291_v41 = vsel %vm290_vm10, %v286_v39, %v1449_v34  ;;  %v292_v42 = vsel %vm290_vm10, %v287_v40, %v1450_v33 }
 0x1e6   :  { %v295_v43 = vpack.c.bf16 %v292_v42, %v291_v41 }
 0x1e8   :  { %1334 = vmatprep.mubr.msk.bf16.mxu1 %vm321_vm11, %v295_v43 }
 0x1e9   :  { %1335 = vmatmul.mubr.msk.bf16.vlgmr.msra.gmra.mxu1 %vm321_vm11, %v296_v44 }
 0x2a9   :  { %v1336_v49 = vpop.f32.mrf.mxu1 }
 0x2aa   :  { %v386_v51 = vmul.f32 %v1336_v49, %v1240_v48  ;;  %v1507_v49 = vld [vmem:[%s1928_s10 + $0x20] sm:$0xff]  }
 0x2ab   :  { %v362_v52 = vpop.f32.mrf.mxu1 }
 0x2ac   :  { %v397_v53 = vadd.f32 %v1241_v50, %v386_v51  ;;  %v384_v54 = vmul.f32 %v1240_v48, %v362_v52  ;;  %v1250_v51 = vld [vmem:[%s1929_s8] ss:$0 sm:$0xff] }
 0x2ad   :  { %v1337_v55 = vpop.f32.mrf.mxu1 }
 0x2ae   :  { %vm401_vm12 = vcmp.gt.f32.partialorder %v397_v53, 0.0  ;;  %v405_v56 = vmul.f32 0.2, %v397_v53  ;;  %v395_v57 = vadd.f32 %v1241_v50, %v384_v54  ;;  %v387_v58 = vmul.f32 %v1337_v55, %v1240_v48 }
 0x2af   :  { %v365_v59 = vpop.f32.mrf.mxu1 }
 0x2b0   :  { %v409_v60 = vsel %vm401_vm12, %v397_v53, %v405_v56  ;;  %vm399_vm13 = vcmp.gt.f32.partialorder %v395_v57, 0.0  ;;  %v403_v61 = vmul.f32 0.2, %v395_v57  ;;  %v398_v62 = vadd.f32 %v1241_v50, %v387_v58  ;;  %v1251_v53 = vld [vmem:[%s1930_s9] ss:$0 sm:$0xff] }
 0x2b1   :  { %413 = vst.msk [vmem:[#allocation2 + $0x28] sm:$0xff] %vm290_vm10, %v409_v60  ;;  %v385_v63 = vmul.f32 %v1240_v48, %v365_v59  ;;  %v1506_v48 = vld [vmem:[%s1928_s10 + $0x28] sm:$0xff]  }
 0x2b2   :  { %v407_v1 = vsel %vm399_vm13, %v395_v57, %v403_v61  ;;  %vm402_vm14 = vcmp.gt.f32.partialorder %v398_v62, 0.0  ;;  %v406_v3 = vmul.f32 0.2, %v398_v62  ;;  %1354 = vmatprep.subr.bf16.mxu1 %v1506_v48 }
 0x2b3   :  { %411 = vst.msk [vmem:[#allocation2 + $0x8] sm:$0xff] %vm290_vm10, %v407_v1  ;;  %v396_v4 = vadd.f32 %v1241_v50, %v385_v63  ;;  %v1508_v50 = vld [vmem:[%s1928_s10 + $0x18] sm:$0xff]   ;;  %1355 = vmatpush3.bf16.msra.mxu1 %v1506_v48 }
 0x2b4   :  { %v410_v5 = vsel %vm402_vm14, %v398_v62, %v406_v3  ;;  %1356 = vmatprep.subr.bf16.mxu1 %v1507_v49 }
 0x2b5   :  { %414 = vst.msk [vmem:[#allocation2 + $0x30] sm:$0xff] %vm290_vm10, %v410_v5  ;;  %vm400_vm15 = vcmp.gt.f32.partialorder %v396_v4, 0.0  ;;  %v404_v6 = vmul.f32 0.2, %v396_v4 }
 0x2b7   :  { %v408_v8 = vsel %vm400_vm15, %v396_v4, %v404_v6  ;;  %1357 = vmatpush3.bf16.msra.mxu1 %v1507_v49  ;;  %v1509_v4 = vld [vmem:[%s1928_s10 + $0x10] sm:$0xff]  }
 0x2b8   :  { %412 = vst.msk [vmem:[#allocation2 + $0x10] sm:$0xff] %vm290_vm10, %v408_v8  ;;  %v421_v10 = vld [vmem:[#allocation2 + $0x28] sm:$0xff]  ;;  %1358 = vmatprep.subr.bf16.mxu1 %v1508_v50 }
 0x2b9   :  { %v417_v31 = vld [vmem:[#allocation2 + $0x27] sm:$0xff] }
 0x2ba   :  { %v419_v15 = vld [vmem:[#allocation2 + $0x8] sm:$0xff] }
 0x2bb   :  { %v415_v36 = vld [vmem:[#allocation2 + $0x7] sm:$0xff]  ;;  %1359 = vmatpush3.bf16.msra.mxu1 %v1508_v50 }
 0x2bc   :  { %v422_v11 = vld [vmem:[#allocation2 + $0x30] sm:$0xff]  ;;  %1360 = vmatprep.subr.bf16.mxu1 %v1509_v4  ;;  %v1811_v50 = vld [vmem:[%s1931_s14 + $0x8] sm:$0xff]  }
 0x2bd   :  { %v1456_v12 = vpack.i.bf16 %v422_v11, %v421_v10  ;;  %v425_v13 = vld [vmem:[#allocation2 + $0x29] sm:$0xff]  ;;  %v426_v14 = vld [vmem:[#allocation2 + $0x31] sm:$0xff] }
 0x2be   :  { %v1471_v18 = vpack.i.bf16 %v426_v14, %v425_v13  ;;  %v418_v32 = vld [vmem:[#allocation2 + $0x2f] sm:$0xff] }
 0x2bf   :  { %1457 = vrot.lane.b32.xlu1 %v1456_v12, %s1548_s27  ;;  %v420_v16 = vld [vmem:[#allocation2 + $0x10] sm:$0xff]  ;;  %1361 = vmatpush3.bf16.msra.mxu1 %v1509_v4  ;;  %v1510_v10 = vld [vmem:[%s1928_s10 + $0x8] sm:$0xff]   ;;  %v1511_v12 = vld [vmem:[%s1928_s10] sm:$0xff]  }
 0x2c0   :  { %v1461_v17 = vpack.i.bf16 %v420_v16, %v419_v15  ;;  %v423_v19 = vld [vmem:[#allocation2 + $0x9] sm:$0xff]  ;;  %v424_v20 = vld [vmem:[#allocation2 + $0x11] sm:$0xff]  ;;  %1362 = vmatprep.subr.bf16.mxu1 %v1510_v10 }
 0x2c1   :  { %v1466_v21 = vpack.i.bf16 %v424_v20, %v423_v19  ;;  %v416_v37 = vld [vmem:[#allocation2 + $0xf] sm:$0xff] }
 0x2c2   :  { %1462 = vrot.lane.b32.xlu0 %v1461_v17, %s1548_s27 }
 0x2c3   :  { %1472 = vrot.lane.b32.xlu1 %v1471_v18, %s1549_s26  ;;  %1363 = vmatpush3.bf16.msra.mxu1 %v1510_v10 }
 0x2c4   :  { %1364 = vmatprep.subr.bf16.mxu1 %v1511_v12 }
 0x2c6   :  { %1467 = vrot.lane.b32.xlu0 %v1466_v21, %s1549_s26 }
 0x2c7   :  { %1365 = vmatpush3.bf16.msra.mxu1 %v1511_v12 }
 0x2c8   :  { %1382 = vmatprep.subr.bf16.mxu1 %v1544_v2 }
 0x331   :  { %v1458_v22 = vpop.permute.xlu1 %1457 }
 0x332   :  { %v1460_v24 = vunpack.i.h.bf16 %v1458_v22  ;;  %v1459_v25 = vunpack.i.l.bf16 %v1458_v22 }
 0x334   :  { %v1463_v23 = vpop.permute.xlu0 %1462  ;;  %v461_v34 = vsel %vm290_vm10, %v417_v31, %v1459_v25  ;;  %v462_v35 = vsel %vm290_vm10, %v418_v32, %v1460_v24 }
 0x335   :  { %v1473_v26 = vpop.permute.xlu1 %1472  ;;  %v1465_v27 = vunpack.i.h.bf16 %v1463_v23  ;;  %v1464_v28 = vunpack.i.l.bf16 %v1463_v23 }
 0x336   :  { %v1475_v29 = vunpack.i.h.bf16 %v1473_v26  ;;  %v1474_v30 = vunpack.i.l.bf16 %v1473_v26 }
 0x337   :  { %v459_v40 = vsel %vm290_vm10, %v415_v36, %v1464_v28  ;;  %v460_v41 = vsel %vm290_vm10, %v416_v37, %v1465_v27 }
 0x338   :  { %v1468_v33 = vpop.permute.xlu0 %1467  ;;  %v465_v42 = vsel %vm63_vm1, %v461_v34, %v1474_v30  ;;  %v466_v43 = vsel %vm63_vm1, %v462_v35, %v1475_v29 }
 0x339   :  { %v1470_v38 = vunpack.i.h.bf16 %v1468_v33  ;;  %v1469_v39 = vunpack.i.l.bf16 %v1468_v33  ;;  %v468_v47 = vpack.c.bf16 %v466_v43, %v465_v42 }
 0x33b   :  { %v463_v44 = vsel %vm63_vm1, %v459_v40, %v1469_v39  ;;  %v464_v45 = vsel %vm63_vm1, %v460_v41, %v1470_v38 }
 0x33c   :  { %v467_v46 = vpack.c.bf16 %v464_v45, %v463_v44 }
 0x33e   :  { %1350 = vmatprep.mubr.msk.bf16.mxu0 %vm517_vm0, %v467_v46 }
 0x33f   :  { %1351 = vmatmul.mubr.msk.bf16.vlgmr.msra.gmra.mxu0 %vm517_vm0, %v468_v47 }
 0x3ff   :  { %v1352_v52 = vpop.f32.mrf.mxu0 }
 0x400   :  { %v582_v54 = vmul.f32 %v1352_v52, %v1250_v51  ;;  %v1819_v52 = vld [vmem:[%s1931_s14] sm:$0xff]  }
 0x401   :  { %v558_v55 = vpop.f32.mrf.mxu0 }
 0x402   :  { %v593_v56 = vadd.f32 %v1251_v53, %v582_v54  ;;  %v580_v57 = vmul.f32 %v1250_v51, %v558_v55  ;;  %v1514_v54 = vld [vmem:[%s1932_s13 + $0x18] sm:$0xff]   ;;  %v1515_v55 = vld [vmem:[%s1932_s13 + $0x10] sm:$0xff]  }
 0x403   :  { %v1353_v58 = vpop.f32.mrf.mxu0  ;;  %1370 = vmatprep.subr.bf16.mxu0 %v1514_v54 }
 0x404   :  { %vm597_vm2 = vcmp.gt.f32.partialorder %v593_v56, 0.0  ;;  %v601_v59 = vmul.f32 0.2, %v593_v56  ;;  %v591_v60 = vadd.f32 %v1251_v53, %v580_v57  ;;  %v583_v61 = vmul.f32 %v1353_v58, %v1250_v51  ;;  %1371 = vmatpush3.bf16.msra.mxu0 %v1514_v54  ;;  %v1517_v57 = vld [vmem:[%s1932_s13] sm:$0xff]  }
 0x405   :  { %v561_v62 = vpop.f32.mrf.mxu0  ;;  %1372 = vmatprep.subr.bf16.mxu0 %v1515_v55 }
 0x406   :  { %v605_v63 = vsel %vm597_vm2, %v593_v56, %v601_v59  ;;  %vm595_vm4 = vcmp.gt.f32.partialorder %v591_v60, 0.0  ;;  %v599_v0 = vmul.f32 0.2, %v591_v60  ;;  %v594_v1 = vadd.f32 %v1251_v53, %v583_v61  ;;  %v1516_v56 = vld [vmem:[%s1932_s13 + $0x8] sm:$0xff]   ;;  %v1260_v59 = vld [vmem:[%s1933_s11] ss:$0 sm:$0xff] }
 0x407   :  { %609 = vst.msk [vmem:[#allocation3 + $0x28] sm:$0xff] %vm290_vm10, %v605_v63  ;;  %v581_v3 = vmul.f32 %v1250_v51, %v561_v62  ;;  %v1261_v63 = vld [vmem:[%s1934_s12] ss:$0 sm:$0xff] }
 0x408   :  { %v603_v5 = vsel %vm595_vm4, %v591_v60, %v599_v0  ;;  %vm598_vm5 = vcmp.gt.f32.partialorder %v594_v1, 0.0  ;;  %v602_v6 = vmul.f32 0.2, %v594_v1  ;;  %1373 = vmatpush3.bf16.msra.mxu0 %v1515_v55 }
 0x409   :  { %607 = vst.msk [vmem:[#allocation3 + $0x8] sm:$0xff] %vm290_vm10, %v603_v5  ;;  %v592_v7 = vadd.f32 %v1251_v53, %v581_v3  ;;  %v1551_v53 = vmov 0   ;;  %1374 = vmatprep.subr.bf16.mxu0 %v1516_v56  ;;  %v1847_v5 = vld [vmem:[%s1935_s16] ss:$0 sm:$0xff] }
 0x40a   :  { %v606_v8 = vsel %vm598_vm5, %v594_v1, %v602_v6 }
 0x40b   :  { %610 = vst.msk [vmem:[#allocation3 + $0x30] sm:$0xff] %vm290_vm10, %v606_v8  ;;  %vm596_vm6 = vcmp.gt.f32.partialorder %v592_v7, 0.0  ;;  %v600_v9 = vmul.f32 0.2, %v592_v7 }
 0x40c   :  { %1375 = vmatpush3.bf16.msra.mxu0 %v1516_v56 }
 0x40d   :  { %v604_v11 = vsel %vm596_vm6, %v592_v7, %v600_v9  ;;  %1376 = vmatprep.subr.bf16.mxu0 %v1517_v57 }
 0x40e   :  { %608 = vst.msk [vmem:[#allocation3 + $0x10] sm:$0xff] %vm290_vm10, %v604_v11  ;;  %v617_v13 = vld [vmem:[#allocation3 + $0x28] sm:$0xff] }
 0x40f   :  { %v613_v34 = vld [vmem:[#allocation3 + $0x27] sm:$0xff] }
 0x410   :  { %v615_v18 = vld [vmem:[#allocation3 + $0x8] sm:$0xff]  ;;  %1377 = vmatpush3.bf16.msra.mxu0 %v1517_v57 }
 0x411   :  { %v611_v39 = vld [vmem:[#allocation3 + $0x7] sm:$0xff]  ;;  %1390 = vmatprep.subr.bf16.mxu0 %v1544_v2 }
 0x412   :  { %v618_v14 = vld [vmem:[#allocation3 + $0x30] sm:$0xff] }
 0x413   :  { %v1476_v15 = vpack.i.bf16 %v618_v14, %v617_v13  ;;  %v621_v16 = vld [vmem:[#allocation3 + $0x29] sm:$0xff]  ;;  %v622_v17 = vld [vmem:[#allocation3 + $0x31] sm:$0xff] }
 0x414   :  { %v1491_v22 = vpack.i.bf16 %v622_v17, %v621_v16  ;;  %v614_v35 = vld [vmem:[#allocation3 + $0x2f] sm:$0xff] }
 0x415   :  { %1477 = vrot.lane.b32.xlu1 %v1476_v15, %s1548_s27  ;;  %v616_v19 = vld [vmem:[#allocation3 + $0x10] sm:$0xff] }
 0x416   :  { %v1481_v20 = vpack.i.bf16 %v616_v19, %v615_v18  ;;  %v619_v21 = vld [vmem:[#allocation3 + $0x9] sm:$0xff]  ;;  %v620_v23 = vld [vmem:[#allocation3 + $0x11] sm:$0xff] }
 0x417   :  { %v1486_v24 = vpack.i.bf16 %v620_v23, %v619_v21  ;;  %v612_v40 = vld [vmem:[#allocation3 + $0xf] sm:$0xff] }
 0x418   :  { %1482 = vrot.lane.b32.xlu0 %v1481_v20, %s1548_s27 }
 0x419   :  { %1492 = vrot.lane.b32.xlu1 %v1491_v22, %s1549_s26 }
 0x41c   :  { %1487 = vrot.lane.b32.xlu0 %v1486_v24, %s1549_s26 }
 0x487   :  { %v1478_v25 = vpop.permute.xlu1 %1477 }
 0x488   :  { %v1480_v27 = vunpack.i.h.bf16 %v1478_v25  ;;  %v1479_v28 = vunpack.i.l.bf16 %v1478_v25 }
 0x48a   :  { %v1483_v26 = vpop.permute.xlu0 %1482  ;;  %v657_v37 = vsel %vm290_vm10, %v613_v34, %v1479_v28  ;;  %v658_v38 = vsel %vm290_vm10, %v614_v35, %v1480_v27 }
 0x48b   :  { %v1493_v29 = vpop.permute.xlu1 %1492  ;;  %v1485_v30 = vunpack.i.h.bf16 %v1483_v26  ;;  %v1484_v31 = vunpack.i.l.bf16 %v1483_v26  ;;  %v1262_v26 = vld [vmem:[%s1936_s15] ss:$0 sm:$0xff]  ;;  %s1552_s15 = smov 96  }
 0x48c   :  { %v1495_v32 = vunpack.i.h.bf16 %v1493_v29  ;;  %v1494_v33 = vunpack.i.l.bf16 %v1493_v29 }
 0x48d   :  { %v655_v43 = vsel %vm290_vm10, %v611_v39, %v1484_v31  ;;  %v656_v44 = vsel %vm290_vm10, %v612_v40, %v1485_v30 }
 0x48e   :  { %v1488_v36 = vpop.permute.xlu0 %1487  ;;  %v661_v45 = vsel %vm63_vm1, %v657_v37, %v1494_v33  ;;  %v662_v46 = vsel %vm63_vm1, %v658_v38, %v1495_v32 }
 0x48f   :  { %v1490_v41 = vunpack.i.h.bf16 %v1488_v36  ;;  %v1489_v42 = vunpack.i.l.bf16 %v1488_v36  ;;  %v664_v51 = vpack.c.bf16 %v662_v46, %v661_v45 }
 0x491   :  { %v659_v47 = vsel %vm63_vm1, %v655_v43, %v1489_v42  ;;  %v660_v48 = vsel %vm63_vm1, %v656_v44, %v1490_v41 }
 0x492   :  { %v663_v49 = vpack.c.bf16 %v660_v48, %v659_v47 }
 0x494   :  { %1366 = vmatprep.mubr.msk.bf16.mxu1 %vm517_vm0, %v663_v49 }
 0x495   :  { %1367 = vmatmul.mubr.msk.bf16.vlgmr.msra.gmra.mxu1 %vm517_vm0, %v664_v51 }
 0x496   :  { %1383 = vmatpush3.bf16.msra.mxu1 %v1811_v50  ;;  %1386 = vmatprep.mubr.msk.bf16.mxu1 %vm1550_vm7, %v1544_v2 }
 0x497   :  { %1384 = vmatprep.subr.bf16.mxu1 %v1544_v2 }
 0x49a   :  { %1385 = vmatpush3.bf16.msra.mxu1 %v1819_v52 }
 0x49d   :  { %1387 = vmatmul.mubr.bf16.vlgmr.msra.gmra.mxu1 %v1551_v53 }
 0x555   :  { %v1368_v58 = vpop.f32.mrf.mxu1 }
 0x556   :  { %v777_v61 = vmul.f32 %v1368_v58, %v1260_v59 }
 0x557   :  { %v753_v60 = vpop.f32.mrf.mxu1 }
 0x558   :  { %v775_v62 = vmul.f32 %v1260_v59, %v753_v60  ;;  %v788_v6 = vadd.f32 %v1261_v63, %v777_v61 }
 0x559   :  { %v1369_v0 = vpop.f32.mrf.mxu1 }
 0x55a   :  { %v778_v1 = vmul.f32 %v1369_v0, %v1260_v59  ;;  %v786_v3 = vadd.f32 %v1261_v63, %v775_v62  ;;  %v796_v15 = vmul.f32 0.2, %v788_v6  ;;  %vm792_vm11 = vcmp.gt.f32.partialorder %v788_v6, 0.0 }
 0x55b   :  { %v756_v4 = vpop.f32.mrf.mxu1 }
 0x55c   :  { %v789_v7 = vadd.f32 %v1261_v63, %v778_v1  ;;  %v776_v8 = vmul.f32 %v1260_v59, %v756_v4  ;;  %v794_v12 = vmul.f32 0.2, %v786_v3  ;;  %vm790_vm9 = vcmp.gt.f32.partialorder %v786_v3, 0.0 }
 0x55d   :  { %v958_v9 = vpop.f32.mrf.mxu1  ;;  %v800_v23 = vsel %vm792_vm11, %v788_v6, %v796_v15 }
 0x55e   :  { %v797_v10 = vmul.f32 0.2, %v789_v7  ;;  %v959_v11 = vadd.f32 %v1847_v5, %v958_v9  ;;  %vm793_vm8 = vcmp.gt.f32.partialorder %v789_v7, 0.0  ;;  %v787_v13 = vadd.f32 %v1261_v63, %v776_v8 }
 0x55f   :  { %v1388_v14 = vpop.f32.mrf.mxu1  ;;  %v798_v20 = vsel %vm790_vm9, %v786_v3, %v794_v12 }
 0x560   :  { %981 = vrot.lane.b32.xlu0 %v959_v11, %s1549_s26  ;;  %vm791_vm12 = vcmp.gt.f32.partialorder %v787_v13, 0.0  ;;  %v795_v16 = vmul.f32 0.2, %v787_v13  ;;  %v801_v18 = vsel %vm793_vm8, %v789_v7, %v797_v10 }
 0x561   :  { %v961_v17 = vpop.f32.mrf.mxu1  ;;  %v803_v25 = vpack.c.bf16 %v801_v18, %v800_v23 }
 0x562   :  { %v962_v19 = vadd.f32 %v1847_v5, %v961_v17  ;;  %v799_v21 = vsel %vm791_vm12, %v787_v13, %v795_v16 }
 0x563   :  { %v1389_v22 = vpop.f32.mrf.mxu1  ;;  %v802_v24 = vpack.c.bf16 %v799_v21, %v798_v20 }
 0x564   :  { %983 = vrot.lane.b32.xlu1 %v962_v19, %s1549_s26 }
 0x565   :  { %1378 = vmatprep.mubr.msk.bf16.mxu0 %vm63_vm1, %v802_v24 }
 0x566   :  { %1379 = vmatmul.mubr.msk.bf16.vlgmr.msra.gmra.mxu0 %vm63_vm1, %v803_v25 }
 0x567   :  { %1391 = vmatpush3.bf16.msra.mxu0 %v1811_v50  ;;  %1394 = vmatprep.mubr.msk.bf16.mxu0 %vm1550_vm7, %v1544_v2 }
 0x568   :  { %1392 = vmatprep.subr.bf16.mxu0 %v1544_v2 }
 0x56b   :  { %1393 = vmatpush3.bf16.msra.mxu0 %v1819_v52 }
 0x5d2   :  { %v982_v42 = vpop.permute.xlu0 %981 }
 0x5d6   :  { %v984_v46 = vpop.permute.xlu1 %983 }
 0x626   :  { %v1380_v27 = vpop.f32.mrf.mxu0 }
 0x627   :  { %v1863_v28 = vadd.f32 %v1380_v27, %v1262_v26 }
 0x628   :  { %v883_v29 = vpop.f32.mrf.mxu0 }
 0x629   :  { %v884_v30 = vadd.f32 %v1262_v26, %v883_v29 }
 0x62a   :  { %v1381_v31 = vpop.f32.mrf.mxu0 }
 0x62b   :  { %v965_v32 = vadd.f32 %v959_v11, %v884_v30  ;;  %v1865_v33 = vadd.f32 %v1381_v31, %v1262_v26 }
 0x62c   :  { %v886_v34 = vpop.f32.mrf.mxu0 }
 0x62d   :  { %v1272_v35 = vmul.f32 -1.442695, %v965_v32  ;;  %v887_v36 = vadd.f32 %v1262_v26, %v886_v34 }
 0x62f   :  { %1520 = vpow2.f32 %v1272_v35  ;;  %v966_v2 = vadd.f32 %v962_v19, %v887_v36 }
 0x631   :  { %v1273_v37 = vmul.f32 -1.442695, %v966_v2 }
 0x633   :  { %1522 = vpow2.f32 %v1273_v37 }
 0x63c   :  { %v1521_v38 = vpop.eup %1520 }
 0x63d   :  { %v973_v39 = vadd.f32 1.0, %v1521_v38 }
 0x63f   :  { %1524 = vrcp.f32 %v973_v39 }
 0x640   :  { %v1523_v40 = vpop.eup %1522 }
 0x641   :  { %v974_v41 = vadd.f32 1.0, %v1523_v40 }
 0x643   :  { %1526 = vrcp.f32 %v974_v41 }
 0x64c   :  { %v1525_v43 = vpop.eup %1524 }
 0x64d   :  { %v987_v44 = vmul.f32 %v1525_v43, %v982_v42  ;;  %v1001_v55 = vsub.f32 1.0, %v1525_v43  ;;  %v1013_v59 = vmul.f32 0.0, %v1525_v43 }
 0x64f   :  { %991 = vrot.lane.b32.xlu0 %v987_v44, %s1549_s26 }
 0x650   :  { %v1527_v45 = vpop.eup %1526 }
 0x651   :  { %v988_v47 = vmul.f32 %v1527_v45, %v984_v46  ;;  %v1002_v57 = vsub.f32 1.0, %v1527_v45  ;;  %v1014_v60 = vmul.f32 0.0, %v1527_v45 }
 0x653   :  { %993 = vrot.lane.b32.xlu1 %v988_v47, %s1549_s26 }
 0x6c1   :  { %v992_v48 = vpop.permute.xlu0 %991 }
 0x6c2   :  { %v997_v49 = vadd.f32 %v992_v48, %v884_v30  ;;  %v1518_v30 = vld [vmem:[%s1937_s17 + $0x8] sm:$0xff]  }
 0x6c3   :  { %1398 = vmatprep.subr.bf16.mxu1 %v1518_v30 }
 0x6c4   :  { %1528 = vtanh.f32 %v997_v49  ;;  %1399 = vmatpush3.bf16.msra.mxu1 %v1518_v30 }
 0x6c5   :  { %v994_v50 = vpop.permute.xlu1 %993 }
 0x6c6   :  { %v998_v51 = vadd.f32 %v994_v50, %v887_v36  ;;  %v1277_v50 = vld [vmem:[%s1938_s18] ss:$0 sm:$0xff] }
 0x6c8   :  { %1530 = vtanh.f32 %v998_v51 }
 0x6d1   :  { %v1529_v52 = vpop.eup %1528 }
 0x6d2   :  { %1005 = vrot.lane.b32.xlu0 %v1529_v52, %s1552_s15 }
 0x6d5   :  { %v1531_v53 = vpop.eup %1530 }
 0x6d6   :  { %1007 = vrot.lane.b32.xlu1 %v1531_v53, %s1552_s15 }
 0x744   :  { %v1006_v54 = vpop.permute.xlu0 %1005 }
 0x745   :  { %v1011_v56 = vmul.f32 %v1006_v54, %v1001_v55 }
 0x747   :  { %v1015_v62 = vadd.f32 %v1013_v59, %v1011_v56 }
 0x748   :  { %v1008_v58 = vpop.permute.xlu1 %1007 }
 0x749   :  { %v1012_v61 = vmul.f32 %v1008_v58, %v1002_v57 }
 0x74b   :  { %v1016_v63 = vadd.f32 %v1014_v60, %v1012_v61 }
 0x74d   :  { %v1027_v0 = vpack.c.bf16 %v1016_v63, %v1015_v62 }
 0x74f   :  { %1029 = vrot.lane.b32.xlu0 %v1027_v0, %s1552_s15 }
 0x7c1   :  { %v1030_v1 = vpop.permute.xlu0 %1029 }
 0x7c2   :  { %1395 = vmatmul.mubr.msk.bf16.vlgmr.msra.gmra.mxu0 %vm290_vm10, %v1030_v1 }
 0x882   :  { %v1068_v3 = vpop.f32.mrf.mxu0 }
 0x883   :  { %v1069_v4 = vadd.f32 %v1847_v5, %v1068_v3 }
 0x884   :  { %v1396_v6 = vpop.f32.mrf.mxu0 }
 0x885   :  { %1091 = vrot.lane.b32.xlu1 %v1069_v4, %s1549_s26  ;;  %v1075_v10 = vadd.f32 %v1069_v4, %v1863_v28 }
 0x886   :  { %v1071_v7 = vpop.f32.mrf.mxu0 }
 0x887   :  { %v1072_v8 = vadd.f32 %v1847_v5, %v1071_v7  ;;  %v1275_v11 = vmul.f32 -1.442695, %v1075_v10 }
 0x888   :  { %v1397_v9 = vpop.f32.mrf.mxu0 }
 0x889   :  { %1093 = vrot.lane.b32.xlu0 %v1072_v8, %s1549_s26  ;;  %v1076_v12 = vadd.f32 %v1072_v8, %v1865_v33  ;;  %1532 = vpow2.f32 %v1275_v11 }
 0x88b   :  { %v1276_v13 = vmul.f32 -1.442695, %v1076_v12 }
 0x88d   :  { %1534 = vpow2.f32 %v1276_v13 }
 0x896   :  { %v1533_v14 = vpop.eup %1532 }
 0x897   :  { %v1083_v15 = vadd.f32 1.0, %v1533_v14 }
 0x899   :  { %1536 = vrcp.f32 %v1083_v15 }
 0x89a   :  { %v1535_v16 = vpop.eup %1534 }
 0x89b   :  { %v1084_v17 = vadd.f32 1.0, %v1535_v16 }
 0x89d   :  { %1538 = vrcp.f32 %v1084_v17 }
 0x8a6   :  { %v1537_v18 = vpop.eup %1536 }
 0x8a7   :  { %v1111_v31 = vsub.f32 1.0, %v1537_v18 }
 0x8aa   :  { %v1539_v20 = vpop.eup %1538 }
 0x8ab   :  { %v1112_v36 = vsub.f32 1.0, %v1539_v20  ;;  %v1124_v38 = vmul.f32 %v1539_v20, %v1016_v63 }
 0x8f7   :  { %v1092_v19 = vpop.permute.xlu1 %1091 }
 0x8f8   :  { %v1097_v5 = vmul.f32 %v1537_v18, %v1092_v19 }
 0x8fa   :  { %1101 = vrot.lane.b32.xlu1 %v1097_v5, %s1549_s26 }
 0x8fb   :  { %v1094_v21 = vpop.permute.xlu0 %1093 }
 0x8fc   :  { %v1098_v22 = vmul.f32 %v1539_v20, %v1094_v21 }
 0x8fe   :  { %1103 = vrot.lane.b32.xlu0 %v1098_v22, %s1549_s26 }
 0x96c   :  { %v1102_v23 = vpop.permute.xlu1 %1101 }
 0x96d   :  { %v1107_v24 = vadd.f32 %v1102_v23, %v1863_v28  ;;  %v1519_v28 = vld [vmem:[%s1937_s17] sm:$0xff]  }
 0x96e   :  { %1400 = vmatprep.subr.bf16.mxu1 %v1519_v28 }
 0x96f   :  { %1540 = vtanh.f32 %v1107_v24  ;;  %1401 = vmatpush3.bf16.msra.mxu1 %v1519_v28 }
 0x970   :  { %v1104_v25 = vpop.permute.xlu0 %1103 }
 0x971   :  { %v1108_v26 = vadd.f32 %v1104_v25, %v1865_v33  ;;  %v1123_v33 = vmul.f32 %v1537_v18, %v1015_v62 }
 0x973   :  { %1542 = vtanh.f32 %v1108_v26 }
 0x97c   :  { %v1541_v27 = vpop.eup %1540 }
 0x97d   :  { %1115 = vrot.lane.b32.xlu1 %v1541_v27, %s1552_s15 }
 0x980   :  { %v1543_v29 = vpop.eup %1542 }
 0x981   :  { %1019 = vrot.lane.b32.xlu1 %v1015_v62, %s1552_s15  ;;  %1117 = vrot.lane.b32.xlu0 %v1543_v29, %s1552_s15 }
 0x985   :  { %1021 = vrot.lane.b32.xlu0 %v1016_v63, %s1552_s15 }
 0x9ef   :  { %v1116_v32 = vpop.permute.xlu1 %1115 }
 0x9f0   :  { %v1121_v34 = vmul.f32 %v1116_v32, %v1111_v31 }
 0x9f2   :  { %v1125_v35 = vadd.f32 %v1123_v33, %v1121_v34 }
 0x9f3   :  { %v1020_v2 = vpop.permute.xlu1 %1019  ;;  %v1118_v37 = vpop.permute.xlu0 %1117 }
 0x9f4   :  { %1025 = vst.msk [vmem:[#allocation4] sm:$0xff] %vm290_vm10, %v1020_v2  ;;  %v1122_v39 = vmul.f32 %v1118_v37, %v1112_v36  ;;  %1129 = vrot.lane.b32.xlu1 %v1125_v35, %s1552_s15 }
 0x9f6   :  { %v1126_v40 = vadd.f32 %v1124_v38, %v1122_v39 }
 0x9f7   :  { %v1022_v41 = vpop.permute.xlu0 %1021 }
 0x9f8   :  { %1026 = vst.msk [vmem:[#allocation4 + $0x8] sm:$0xff] %vm290_vm10, %v1022_v41  ;;  %1131 = vrot.lane.b32.xlu0 %v1126_v40, %s1552_s15 }
 0x9fb   :  { %v1138_v42 = vld [vmem:[#allocation4] sm:$0xff] }
 0x9ff   :  { %v1139_v43 = vld [vmem:[#allocation4 + $0x8] sm:$0xff] }
 0xa00   :  { %v1142_v44 = vpack.c.bf16 %v1139_v43, %v1138_v42 }
 0xa02   :  { %1402 = vmatprep.mubr.msk.bf16.mxu1 %vm290_vm10, %v1142_v44 }
 0xa66   :  { %v1130_v45 = vpop.permute.xlu1 %1129 }
 0xa67   :  { %1136 = vst.msk [vmem:[#allocation4 + $0x10] sm:$0xff] %vm290_vm10, %v1130_v45 }
 0xa6a   :  { %v1132_v46 = vpop.permute.xlu0 %1131 }
 0xa6b   :  { %1137 = vst.msk [vmem:[#allocation4 + $0x18] sm:$0xff] %vm290_vm10, %v1132_v46 }
 0xa6e   :  { %v1140_v47 = vld [vmem:[#allocation4 + $0x10] sm:$0xff] }
 0xa72   :  { %v1141_v48 = vld [vmem:[#allocation4 + $0x18] sm:$0xff] }
 0xa73   :  { %v1143_v49 = vpack.c.bf16 %v1141_v48, %v1140_v47 }
 0xa75   :  { %1403 = vmatmul.mubr.msk.bf16.vlgmr.msra.gmra.mxu1 %vm290_vm10, %v1143_v49 }
 0xb35   :  { %v1404_v51 = vpop.f32.mrf.mxu1 }
 0xb36   :  { %v1216_v52 = vadd.f32 %v1404_v51, %v1277_v50 }
 0xb37   :  { %v1207_v53 = vpop.f32.mrf.mxu1 }
 0xb38   :  { %1224 = vst.msk [vmem:[%s1939_s19 + $0x10] sm:$0xff] %vm129_vm3, %v1216_v52  ;;  %v1208_v54 = vadd.f32 %v1277_v50, %v1207_v53 }
 0xb39   :  { %v1405_v55 = vpop.f32.mrf.mxu1 }
 0xb3a   :  { %1222 = vst.msk [vmem:[%s1939_s19] sm:$0xff] %vm129_vm3, %v1208_v54  ;;  %v1219_v56 = vadd.f32 %v1405_v55, %v1277_v50 }
 0xb3b   :  { %v1210_v57 = vpop.f32.mrf.mxu1 }
 0xb3c   :  { %1225 = vst.msk [vmem:[%s1939_s19 + $0x18] sm:$0xff] %vm129_vm3, %v1219_v56  ;;  %v1211_v58 = vadd.f32 %v1277_v50, %v1210_v57 }
 0xb3e   :  { %1223 = vst.msk [vmem:[%s1939_s19 + $0x8] sm:$0xff] %vm129_vm3, %v1211_v58 }

</bundles_post_ra>
